<compile_context>
chip_gen: v7x
topology: tpu7x:2x2x1
jax: 0.10.0
libtpu: 0.0.40
codegen_flags: <defaults>
</compile_context>

<pallas_src>
import jax
import jax.numpy as jnp
from jax import lax
from jax.experimental import pallas as pl
from jax.experimental.pallas import tpu as pltpu

_HIGHEST = lax.Precision.HIGHEST


def _stackrnn_seq_kernel(
    x_ref,          # (1, B, idim)                 per-step input block
    h0_ref,         # (B, hdim)                    initial hidden (read at t==0)
    st0_ref,        # (depth, B, stsize)           initial stack  (read at t==0)
    w_in_ref,       # (idim+hdim+2*stsize, hdim)   fused [i2h; h2h; s2h0; s2h1]
    b_in_ref,       # (1, hdim)                    pre-summed bias
    w_head_ref,     # (hdim, 3*stsize+stsize+odim) fused [h2a | h2s | h2o]
    b_head_ref,     # (1, 3*stsize+stsize+odim)
    out_ref,        # (1, B, odim)                 per-step output block
    hfin_ref,       # (B, hdim)         final hidden  (carried; VMEM-resident)
    stfin_ref,      # (depth, B, stsize) final stack   (carried; VMEM-resident)
):
    t = pl.program_id(0)

    # Seed the carried state (held in the revisited output blocks) at t == 0.
    @pl.when(t == 0)
    def _():
        hfin_ref[...] = h0_ref[...]
        stfin_ref[...] = st0_ref[...]

    x = x_ref[0]                        # (B, idim)
    h = hfin_ref[...]                   # (B, hdim)   state from step t-1
    st = stfin_ref[...]                 # (depth, B, stsize)
    stsize = stfin_ref.shape[2]
    odim = out_ref.shape[2]

    # ---- fused hidden pre-activation: one MXU pass over K = idim+hdim+2*stsize
    feat = jnp.concatenate([x, h, st[0], st[1]], axis=-1)        # (B, K_in)
    pre = (
        jnp.dot(feat, w_in_ref[...], precision=_HIGHEST,
                preferred_element_type=jnp.float32)
        + b_in_ref[...]
    )
    hidden = jax.nn.sigmoid(pre)                                 # (B, hdim)

    # ---- fused heads: one MXU pass producing [a0 | a1 | a2 | top | out]
    head = (
        jnp.dot(hidden, w_head_ref[...], precision=_HIGHEST,
                preferred_element_type=jnp.float32)
        + b_head_ref[...]
    )
    a0 = head[:, 0 * stsize:1 * stsize]
    a1 = head[:, 1 * stsize:2 * stsize]
    a2 = head[:, 2 * stsize:3 * stsize]
    top_pre = head[:, 3 * stsize:4 * stsize]
    out = head[:, 4 * stsize:4 * stsize + odim]

    # softmax over the 3 actions (dim=-2 of the (B, 3, stsize) view); exact
    # reciprocal so errors do not compound through the recurrence.
    m = jnp.maximum(jnp.maximum(a0, a1), a2)
    e0 = jnp.exp(a0 - m)
    e1 = jnp.exp(a1 - m)
    e2 = jnp.exp(a2 - m)
    inv = 1.0 / (e0 + e1 + e2)
    act0 = e0 * inv
    act1 = e1 * inv
    act2 = e2 * inv

    top = jax.nn.sigmoid(top_pre)                                # (B, stsize)

    # ---- vectorized stack update (single slab, single store)
    # push = [top, stack[:-1]],  pop = [stack[1:], -1]
    empty = jnp.full((1,) + top.shape, -1.0, dtype=top.dtype)    # (1, B, stsize)
    push = jnp.concatenate([top[None], st[:-1]], axis=0)         # (depth, B, stsize)
    pop = jnp.concatenate([st[1:], empty], axis=0)               # (depth, B, stsize)
    new_st = push * act0[None] + pop * act1[None] + st * act2[None]

    # carry state forward in the VMEM-resident output blocks
    hfin_ref[...] = hidden
    stfin_ref[...] = new_st

    # per-step output (out = h2o(dropout(hidden)); dropout == identity in eval)
    out_ref[0] = out.astype(out_ref.dtype)


def _fuse_params(params):
    """Fuse the 7 linears into one input-side and one head-side weight."""
    w_in = jnp.concatenate(
        [params["w_i2h"], params["w_h2h"], params["w_s2h0"], params["w_s2h1"]], axis=0
    )
    b_in = params["b_i2h"] + params["b_h2h"] + params["b_s2h0"] + params["b_s2h1"]
    w_head = jnp.concatenate(
        [params["w_h2a"], params["w_h2s"], params["w_h2o"]], axis=1
    )
    b_head = jnp.concatenate(
        [params["b_h2a"], params["b_h2s"], params["b_h2o"]], axis=1
    )
    return w_in, b_in, w_head, b_head


@jax.jit
def stack_rnn_sequence(xs, hidden, stack, params):
    """Run the StackRNN over a whole sequence in one Pallas kernel.

    xs: (T, B, idim), hidden: (B, hdim), stack: (B, depth, stsize).
    Returns (out_seq (T,B,odim), final_hidden (B,hdim), final_stack (B,depth,stsize)).
    """
    T, B, idim = xs.shape
    hdim = hidden.shape[1]
    depth, stsize = stack.shape[1], stack.shape[2]
    odim = params["w_h2o"].shape[1]

    w_in, b_in, w_head, b_head = _fuse_params(params)
    stack_dbf = jnp.transpose(stack, (1, 0, 2))          # (depth, B, stsize)

    out_seq, h_fin, st_fin = pl.pallas_call(
        _stackrnn_seq_kernel,
        out_shape=(
            jax.ShapeDtypeStruct((T, B, odim), jnp.float32),
            jax.ShapeDtypeStruct((B, hdim), jnp.float32),
            jax.ShapeDtypeStruct((depth, B, stsize), jnp.float32),
        ),
        grid_spec=pltpu.PrefetchScalarGridSpec(
            num_scalar_prefetch=0,
            grid=(T,),
            in_specs=[
                pl.BlockSpec((1, B, idim), lambda t: (t, 0, 0)),
                pl.BlockSpec((B, hdim), lambda t: (0, 0)),
                pl.BlockSpec((depth, B, stsize), lambda t: (0, 0, 0)),
                # weights/biases: constant index_map -> DMA'd once, VMEM-resident
                pl.BlockSpec(w_in.shape, lambda t: (0, 0)),
                pl.BlockSpec(b_in.shape, lambda t: (0, 0)),
                pl.BlockSpec(w_head.shape, lambda t: (0, 0)),
                pl.BlockSpec(b_head.shape, lambda t: (0, 0)),
            ],
            out_specs=(
                pl.BlockSpec((1, B, odim), lambda t: (t, 0, 0)),
                # constant index_map: block stays resident in VMEM across the
                # whole grid (used as the recurrent carry), one HBM writeback.
                pl.BlockSpec((B, hdim), lambda t: (0, 0)),
                pl.BlockSpec((depth, B, stsize), lambda t: (0, 0, 0)),
            ),
        ),
        compiler_params=pltpu.CompilerParams(
            dimension_semantics=("arbitrary",),   # sequential recurrence over T
        ),
    )(xs, hidden, stack_dbf, w_in, b_in, w_head, b_head)

    return out_seq, h_fin, jnp.transpose(st_fin, (1, 0, 2))


def stack_rnn_forward(x, hidden, stack, params):
    """Single-step forward with the original module's (out, hidden, stack) API."""
    out_seq, h_fin, st_fin = stack_rnn_sequence(x[None], hidden, stack, params)
    return out_seq[0], h_fin, st_fin


def init_params(key, idim, hdim, odim, stsize):
    """Deterministic PyTorch-style uniform init; weights stored as (in, out)."""
    def linear(key, fan_in, fan_out):
        kw, kb = jax.random.split(key)
        bound = 1.0 / jnp.sqrt(float(fan_in))
        w = jax.random.uniform(kw, (fan_in, fan_out), jnp.float32, -bound, bound)
        b = jax.random.uniform(kb, (1, fan_out), jnp.float32, -bound, bound)
        return w, b

    keys = jax.random.split(key, 7)
    p = {}
    p["w_i2h"], p["b_i2h"] = linear(keys[0], idim, hdim)
    p["w_h2h"], p["b_h2h"] = linear(keys[1], hdim, hdim)
    p["w_h2o"], p["b_h2o"] = linear(keys[2], hdim, odim)
    p["w_h2a"], p["b_h2a"] = linear(keys[3], hdim, 3 * stsize)
    p["w_h2s"], p["b_h2s"] = linear(keys[4], hdim, stsize)
    p["w_s2h0"], p["b_s2h0"] = linear(keys[5], stsize, hdim)
    p["w_s2h1"], p["b_s2h1"] = linear(keys[6], stsize, hdim)
    return p


def _mm(a, b):
    # Full-precision f32 matmul for the reference (matches the kernel's dots).
    return jnp.dot(a, b, precision=_HIGHEST)


def _reference_step(x, hidden, stack, p):
    """Pure-JAX reference mirroring the PyTorch module (eval-mode dropout)."""
    st0, st1 = stack[:, 0], stack[:, 1]
    h = jax.nn.sigmoid(
        _mm(x, p["w_i2h"]) + p["b_i2h"]
        + _mm(hidden, p["w_h2h"]) + p["b_h2h"]
        + _mm(st0, p["w_s2h0"]) + p["b_s2h0"]
        + _mm(st1, p["w_s2h1"]) + p["b_s2h1"]
    )
    stsize = stack.shape[2]
    act = jax.nn.softmax(
        (_mm(h, p["w_h2a"]) + p["b_h2a"]).reshape(-1, 3, stsize), axis=-2
    )
    top = jax.nn.sigmoid(_mm(h, p["w_h2s"]) + p["b_h2s"])[:, None, :]
    push = jnp.concatenate([top, stack[:, :-1]], axis=-2)
    empty = jnp.full((x.shape[0], 1, stsize), -1.0, jnp.float32)
    pop = jnp.concatenate([stack[:, 1:], empty], axis=-2)
    new_stack = (push * act[:, 0][:, None, :]
                 + pop * act[:, 1][:, None, :]
                 + stack * act[:, 2][:, None, :])
    out = _mm(h, p["w_h2o"]) + p["b_h2o"]
    return out, h, new_stack


def _reference_sequence(xs, hidden, stack, p):
    outs = []
    for t in range(xs.shape[0]):
        o, hidden, stack = _reference_step(xs[t], hidden, stack, p)
        outs.append(o)
    return jnp.stack(outs, axis=0), hidden, stack


if __name__ == "__main__":
    T, B, idim, hdim, odim, stsize, depth = 8, 8, 16, 32, 16, 64, 8

    key = jax.random.PRNGKey(0)
    k_p, k_x, k_h, k_s = jax.random.split(key, 4)

    params = init_params(k_p, idim, hdim, odim, stsize)
    xs = jax.random.normal(k_x, (T, B, idim), jnp.float32)
    hidden = jax.random.normal(k_h, (B, hdim), jnp.float32)
    stack = jax.random.normal(k_s, (B, depth, stsize), jnp.float32)

    # Whole-sequence kernel (the optimized path).
    out_seq, h_fin, st_fin = jax.block_until_ready(
        stack_rnn_sequence(xs, hidden, stack, params)
    )
    ref_out, ref_h, ref_st = _reference_sequence(xs, hidden, stack, params)

    atol = rtol = 2e-3
    assert jnp.allclose(out_seq, ref_out, atol=atol, rtol=rtol)
    assert jnp.allclose(h_fin, ref_h, atol=atol, rtol=rtol)
    assert jnp.allclose(st_fin, ref_st, atol=atol, rtol=rtol)

    # Single-step path (original module forward semantics).
    out1, h1, st1 = jax.block_until_ready(
        stack_rnn_forward(xs[0], hidden, stack, params)
    )
    r_o, r_h, r_s = _reference_step(xs[0], hidden, stack, params)
    assert jnp.allclose(out1, r_o, atol=atol, rtol=rtol)
    assert jnp.allclose(h1, r_h, atol=atol, rtol=rtol)
    assert jnp.allclose(st1, r_s, atol=atol, rtol=rtol)

    print("KERNEL_OK")
</pallas_src>

<mosaic_0001>
module attributes {stable_mosaic.version = 11 : i64} {
  func.func @_stackrnn_seq_kernel(%arg0: i32, %arg1: memref<1x8x16xf32, #tpu.memory_space<vmem>>, %arg2: memref<8x32xf32, #tpu.memory_space<vmem>>, %arg3: memref<8x8x64xf32, #tpu.memory_space<vmem>>, %arg4: memref<176x32xf32, #tpu.memory_space<vmem>>, %arg5: memref<1x32xf32, #tpu.memory_space<vmem>>, %arg6: memref<32x272xf32, #tpu.memory_space<vmem>>, %arg7: memref<1x272xf32, #tpu.memory_space<vmem>>, %arg8: memref<1x8x16xf32, #tpu.memory_space<vmem>>, %arg9: memref<8x32xf32, #tpu.memory_space<vmem>>, %arg10: memref<8x8x64xf32, #tpu.memory_space<vmem>>) attributes {dimension_semantics = [#tpu.dimension_semantics<arbitrary>], iteration_bounds = array<i64: 8>, scalar_prefetch = 0 : i64, scratch_operands = 0 : i64, tpu.core_type = #tpu.core_type<tc>, window_params = [{transform_indices = @transform_0, window_bounds = array<i64: 1, 8, 16>}, {pipeline_mode = #tpu.pipeline_mode<synchronous>, transform_indices = @transform_1, window_bounds = array<i64: 8, 32>}, {pipeline_mode = #tpu.pipeline_mode<synchronous>, transform_indices = @transform_2, window_bounds = array<i64: 8, 8, 64>}, {pipeline_mode = #tpu.pipeline_mode<synchronous>, transform_indices = @transform_3, window_bounds = array<i64: 176, 32>}, {pipeline_mode = #tpu.pipeline_mode<synchronous>, transform_indices = @transform_4, window_bounds = array<i64: 1, 32>}, {pipeline_mode = #tpu.pipeline_mode<synchronous>, transform_indices = @transform_5, window_bounds = array<i64: 32, 272>}, {pipeline_mode = #tpu.pipeline_mode<synchronous>, transform_indices = @transform_6, window_bounds = array<i64: 1, 272>}, {transform_indices = @transform_7, window_bounds = array<i64: 1, 8, 16>}, {pipeline_mode = #tpu.pipeline_mode<synchronous>, transform_indices = @transform_8, window_bounds = array<i64: 8, 32>}, {pipeline_mode = #tpu.pipeline_mode<synchronous>, transform_indices = @transform_9, window_bounds = array<i64: 8, 8, 64>}]} {
    %c0_i32 = arith.constant 0 : i32
    %0 = arith.cmpi eq, %arg0, %c0_i32 : i32
    %1 = arith.extui %0 : i1 to i32
    %c0_i32_0 = arith.constant 0 : i32
    %2 = arith.cmpi ne, %1, %c0_i32_0 : i32
    scf.if %2 {
      %c0_29 = arith.constant 0 : index
      %c0_30 = arith.constant 0 : index
      %74 = vector.load %arg2[%c0_29, %c0_30] : memref<8x32xf32, #tpu.memory_space<vmem>>, vector<8x32xf32>
      %c0_31 = arith.constant 0 : index
      %c0_32 = arith.constant 0 : index
      %75 = vector.load %arg9[%c0_31, %c0_32] : memref<8x32xf32, #tpu.memory_space<vmem>>, vector<8x32xf32>
      tpu.vector_store %arg9[%c0_31, %c0_32], %74 {strides = array<i32>} : memref<8x32xf32, #tpu.memory_space<vmem>>, vector<8x32xf32>,
      %c0_33 = arith.constant 0 : index
      %c0_34 = arith.constant 0 : index
      %c0_35 = arith.constant 0 : index
      %76 = vector.load %arg3[%c0_33, %c0_34, %c0_35] : memref<8x8x64xf32, #tpu.memory_space<vmem>>, vector<8x8x64xf32>
      %c0_36 = arith.constant 0 : index
      %c0_37 = arith.constant 0 : index
      %c0_38 = arith.constant 0 : index
      %77 = vector.load %arg10[%c0_36, %c0_37, %c0_38] : memref<8x8x64xf32, #tpu.memory_space<vmem>>, vector<8x8x64xf32>
      tpu.vector_store %arg10[%c0_36, %c0_37, %c0_38], %76 {strides = array<i32>} : memref<8x8x64xf32, #tpu.memory_space<vmem>>, vector<8x8x64xf32>,
    } else {
    }
    %c0 = arith.constant 0 : index
    %c0_1 = arith.constant 0 : index
    %c0_2 = arith.constant 0 : index
    %3 = vector.load %arg1[%c0, %c0_1, %c0_2] : memref<1x8x16xf32, #tpu.memory_space<vmem>>, vector<1x8x16xf32>
    %4 = vector.shape_cast %3 : vector<1x8x16xf32> to vector<8x16xf32>
    %c0_3 = arith.constant 0 : index
    %c0_4 = arith.constant 0 : index
    %5 = vector.load %arg9[%c0_3, %c0_4] : memref<8x32xf32, #tpu.memory_space<vmem>>, vector<8x32xf32>
    %c0_5 = arith.constant 0 : index
    %c0_6 = arith.constant 0 : index
    %c0_7 = arith.constant 0 : index
    %6 = vector.load %arg10[%c0_5, %c0_6, %c0_7] : memref<8x8x64xf32, #tpu.memory_space<vmem>>, vector<8x8x64xf32>
    %7 = vector.extract_strided_slice %6 {offsets = [0, 0, 0], sizes = [1, 8, 64], strides = [1, 1, 1]} : vector<8x8x64xf32> to vector<1x8x64xf32>
    %8 = vector.shape_cast %7 : vector<1x8x64xf32> to vector<8x64xf32>
    %9 = vector.extract_strided_slice %6 {offsets = [1, 0, 0], sizes = [1, 8, 64], strides = [1, 1, 1]} : vector<8x8x64xf32> to vector<1x8x64xf32>
    %10 = vector.shape_cast %9 : vector<1x8x64xf32> to vector<8x64xf32>
    %11 = tpu.concatenate %4, %5, %8, %10 in 1 : vector<8x16xf32>, vector<8x32xf32>, vector<8x64xf32>, vector<8x64xf32> -> vector<8x176xf32>
    %c0_8 = arith.constant 0 : index
    %c0_9 = arith.constant 0 : index
    %12 = vector.load %arg4[%c0_8, %c0_9] : memref<176x32xf32, #tpu.memory_space<vmem>>, vector<176x32xf32>
    %cst = arith.constant dense<0.000000e+00> : vector<8x32xf32>
    %13 = tpu.matmul %11, %12, %cst {dimension_numbers = #tpu.dot_dimension_numbers<[1], [0], [0], [1], [0, 0, 1, 1], [], []>, precision = #tpu.contract_precision<fp32>} : vector<8x176xf32>, vector<176x32xf32>, vector<8x32xf32> -> vector<8x32xf32>
    %c0_10 = arith.constant 0 : index
    %c0_11 = arith.constant 0 : index
    %14 = vector.load %arg5[%c0_10, %c0_11] : memref<1x32xf32, #tpu.memory_space<vmem>>, vector<1x32xf32>
    %15 = vector.broadcast %14 : vector<1x32xf32> to vector<8x32xf32>
    %16 = arith.addf %13, %15 : vector<8x32xf32>
    %17 = arith.negf %16 : vector<8x32xf32>
    %18 = math.exp %17 : vector<8x32xf32>
    %cst_12 = arith.constant 1.000000e+00 : f32
    %19 = vector.broadcast %cst_12 : f32 to vector<8x32xf32>
    %20 = arith.addf %19, %18 : vector<8x32xf32>
    %21 = arith.divf %19, %20 : vector<8x32xf32>
    %c0_13 = arith.constant 0 : index
    %c0_14 = arith.constant 0 : index
    %22 = vector.load %arg6[%c0_13, %c0_14] : memref<32x272xf32, #tpu.memory_space<vmem>>, vector<32x272xf32>
    %cst_15 = arith.constant dense<0.000000e+00> : vector<8x272xf32>
    %23 = tpu.matmul %21, %22, %cst_15 {dimension_numbers = #tpu.dot_dimension_numbers<[1], [0], [0], [1], [0, 0, 1, 1], [], []>, precision = #tpu.contract_precision<fp32>} : vector<8x32xf32>, vector<32x272xf32>, vector<8x272xf32> -> vector<8x272xf32>
    %c0_16 = arith.constant 0 : index
    %c0_17 = arith.constant 0 : index
    %24 = vector.load %arg7[%c0_16, %c0_17] : memref<1x272xf32, #tpu.memory_space<vmem>>, vector<1x272xf32>
    %25 = vector.broadcast %24 : vector<1x272xf32> to vector<8x272xf32>
    %26 = arith.addf %23, %25 : vector<8x272xf32>
    %27 = vector.extract_strided_slice %26 {offsets = [0, 0], sizes = [8, 64], strides = [1, 1]} : vector<8x272xf32> to vector<8x64xf32>
    %28 = vector.extract_strided_slice %26 {offsets = [0, 64], sizes = [8, 64], strides = [1, 1]} : vector<8x272xf32> to vector<8x64xf32>
    %29 = vector.extract_strided_slice %26 {offsets = [0, 128], sizes = [8, 64], strides = [1, 1]} : vector<8x272xf32> to vector<8x64xf32>
    %30 = vector.extract_strided_slice %26 {offsets = [0, 192], sizes = [8, 64], strides = [1, 1]} : vector<8x272xf32> to vector<8x64xf32>
    %31 = vector.extract_strided_slice %26 {offsets = [0, 256], sizes = [8, 16], strides = [1, 1]} : vector<8x272xf32> to vector<8x16xf32>
    %32 = arith.maximumf %27, %28 : vector<8x64xf32>
    %33 = arith.maximumf %32, %29 : vector<8x64xf32>
    %34 = arith.subf %27, %33 : vector<8x64xf32>
    %35 = math.exp %34 : vector<8x64xf32>
    %36 = arith.subf %28, %33 : vector<8x64xf32>
    %37 = math.exp %36 : vector<8x64xf32>
    %38 = arith.subf %29, %33 : vector<8x64xf32>
    %39 = math.exp %38 : vector<8x64xf32>
    %40 = arith.addf %35, %37 : vector<8x64xf32>
    %41 = arith.addf %40, %39 : vector<8x64xf32>
    %cst_18 = arith.constant 1.000000e+00 : f32
    %42 = vector.broadcast %cst_18 : f32 to vector<8x64xf32>
    %43 = arith.divf %42, %41 : vector<8x64xf32>
    %44 = arith.mulf %35, %43 : vector<8x64xf32>
    %45 = arith.mulf %37, %43 : vector<8x64xf32>
    %46 = arith.mulf %39, %43 : vector<8x64xf32>
    %47 = arith.negf %30 : vector<8x64xf32>
    %48 = math.exp %47 : vector<8x64xf32>
    %cst_19 = arith.constant 1.000000e+00 : f32
    %49 = vector.broadcast %cst_19 : f32 to vector<8x64xf32>
    %50 = arith.addf %49, %48 : vector<8x64xf32>
    %51 = arith.divf %49, %50 : vector<8x64xf32>
    %cst_20 = arith.constant -1.000000e+00 : f32
    %52 = vector.broadcast %cst_20 : f32 to vector<1x8x64xf32>
    %53 = vector.shape_cast %51 : vector<8x64xf32> to vector<1x8x64xf32>
    %54 = vector.extract_strided_slice %6 {offsets = [0, 0, 0], sizes = [7, 8, 64], strides = [1, 1, 1]} : vector<8x8x64xf32> to vector<7x8x64xf32>
    %55 = tpu.concatenate %53, %54 in 0 : vector<1x8x64xf32>, vector<7x8x64xf32> -> vector<8x8x64xf32>
    %56 = vector.extract_strided_slice %6 {offsets = [1, 0, 0], sizes = [7, 8, 64], strides = [1, 1, 1]} : vector<8x8x64xf32> to vector<7x8x64xf32>
    %57 = tpu.concatenate %56, %52 in 0 : vector<7x8x64xf32>, vector<1x8x64xf32> -> vector<8x8x64xf32>
    %58 = vector.shape_cast %44 : vector<8x64xf32> to vector<1x8x64xf32>
    %59 = vector.broadcast %58 : vector<1x8x64xf32> to vector<8x8x64xf32>
    %60 = arith.mulf %55, %59 : vector<8x8x64xf32>
    %61 = vector.shape_cast %45 : vector<8x64xf32> to vector<1x8x64xf32>
    %62 = vector.broadcast %61 : vector<1x8x64xf32> to vector<8x8x64xf32>
    %63 = arith.mulf %57, %62 : vector<8x8x64xf32>
    %64 = arith.addf %60, %63 : vector<8x8x64xf32>
    %65 = vector.shape_cast %46 : vector<8x64xf32> to vector<1x8x64xf32>
    %66 = vector.broadcast %65 : vector<1x8x64xf32> to vector<8x8x64xf32>
    %67 = arith.mulf %6, %66 : vector<8x8x64xf32>
    %68 = arith.addf %64, %67 : vector<8x8x64xf32>
    %c0_21 = arith.constant 0 : index
    %c0_22 = arith.constant 0 : index
    %69 = vector.load %arg9[%c0_21, %c0_22] : memref<8x32xf32, #tpu.memory_space<vmem>>, vector<8x32xf32>
    tpu.vector_store %arg9[%c0_21, %c0_22], %21 {strides = array<i32>} : memref<8x32xf32, #tpu.memory_space<vmem>>, vector<8x32xf32>,
    %c0_23 = arith.constant 0 : index
    %c0_24 = arith.constant 0 : index
    %c0_25 = arith.constant 0 : index
    %70 = vector.load %arg10[%c0_23, %c0_24, %c0_25] : memref<8x8x64xf32, #tpu.memory_space<vmem>>, vector<8x8x64xf32>
    tpu.vector_store %arg10[%c0_23, %c0_24, %c0_25], %68 {strides = array<i32>} : memref<8x8x64xf32, #tpu.memory_space<vmem>>, vector<8x8x64xf32>,
    %c0_26 = arith.constant 0 : index
    %c0_27 = arith.constant 0 : index
    %c0_28 = arith.constant 0 : index
    %71 = vector.load %arg8[%c0_26, %c0_27, %c0_28] : memref<1x8x16xf32, #tpu.memory_space<vmem>>, vector<1x8x16xf32>
    %72 = vector.shape_cast %71 : vector<1x8x16xf32> to vector<8x16xf32>
    %73 = vector.shape_cast %31 : vector<8x16xf32> to vector<1x8x16xf32>
    tpu.vector_store %arg8[%c0_26, %c0_27, %c0_28], %73 {strides = array<i32>} : memref<1x8x16xf32, #tpu.memory_space<vmem>>, vector<1x8x16xf32>,
    return
  }
  func.func @transform_0(%arg0: i32) -> (i32, i32, i32) {
    %c0_i32 = arith.constant 0 : i32
    %c0_i32_0 = arith.constant 0 : i32
    %c0_i32_1 = arith.constant 0 : i32
    return %arg0, %c0_i32, %c0_i32_0 : i32, i32, i32
  }
  func.func @transform_1(%arg0: i32) -> (i32, i32) {
    %c0_i32 = arith.constant 0 : i32
    %c0_i32_0 = arith.constant 0 : i32
    %c0_i32_1 = arith.constant 0 : i32
    return %c0_i32, %c0_i32_0 : i32, i32
  }
  func.func @transform_2(%arg0: i32) -> (i32, i32, i32) {
    %c0_i32 = arith.constant 0 : i32
    %c0_i32_0 = arith.constant 0 : i32
    %c0_i32_1 = arith.constant 0 : i32
    %c0_i32_2 = arith.constant 0 : i32
    return %c0_i32, %c0_i32_0, %c0_i32_1 : i32, i32, i32
  }
  func.func @transform_3(%arg0: i32) -> (i32, i32) {
    %c0_i32 = arith.constant 0 : i32
    %c0_i32_0 = arith.constant 0 : i32
    %c0_i32_1 = arith.constant 0 : i32
    return %c0_i32, %c0_i32_0 : i32, i32
  }
  func.func @transform_4(%arg0: i32) -> (i32, i32) {
    %c0_i32 = arith.constant 0 : i32
    %c0_i32_0 = arith.constant 0 : i32
    %c0_i32_1 = arith.constant 0 : i32
    return %c0_i32, %c0_i32_0 : i32, i32
  }
  func.func @transform_5(%arg0: i32) -> (i32, i32) {
    %c0_i32 = arith.constant 0 : i32
    %c0_i32_0 = arith.constant 0 : i32
    %c0_i32_1 = arith.constant 0 : i32
    return %c0_i32, %c0_i32_0 : i32, i32
  }
  func.func @transform_6(%arg0: i32) -> (i32, i32) {
    %c0_i32 = arith.constant 0 : i32
    %c0_i32_0 = arith.constant 0 : i32
    %c0_i32_1 = arith.constant 0 : i32
    return %c0_i32, %c0_i32_0 : i32, i32
  }
  func.func @transform_7(%arg0: i32) -> (i32, i32, i32) {
    %c0_i32 = arith.constant 0 : i32
    %c0_i32_0 = arith.constant 0 : i32
    %c0_i32_1 = arith.constant 0 : i32
    return %arg0, %c0_i32, %c0_i32_0 : i32, i32, i32
  }
  func.func @transform_8(%arg0: i32) -> (i32, i32) {
    %c0_i32 = arith.constant 0 : i32
    %c0_i32_0 = arith.constant 0 : i32
    %c0_i32_1 = arith.constant 0 : i32
    return %c0_i32, %c0_i32_0 : i32, i32
  }
  func.func @transform_9(%arg0: i32) -> (i32, i32, i32) {
    %c0_i32 = arith.constant 0 : i32
    %c0_i32_0 = arith.constant 0 : i32
    %c0_i32_1 = arith.constant 0 : i32
    %c0_i32_2 = arith.constant 0 : i32
    return %c0_i32, %c0_i32_0, %c0_i32_1 : i32, i32, i32
  }
}

</mosaic_0001>

<bundles_post_ra>
// kernel: stack_rnn_sequence.1
= control target key start
LH: loop header
LB: loop body
LE: loop exit
PB: predicated region body
PF: predicated region fallthrough
CT: control target
= control target key end

     0   :  { %15 = vsyncpa [#allocation3], 0  ;;  %s4130_s0 = inlined_call_operand.vmem [shape: f32[8,8,16], index: 0, kind: input, shape index: {}]   ;;  %s4131_s1 = inlined_call_operand.vmem [shape: f32[8,32], index: 1, kind: input, shape index: {}]   ;;  %s4132_s2 = inlined_call_operand.vmem [shape: f32[8,8,64], index: 2, kind: input, shape index: {}]   ;;  %s4133_s3 = inlined_call_operand.vmem [shape: f32[176,32], index: 3, kind: input, shape index: {}]   ;;  %s4134_s4 = inlined_call_operand.vmem [shape: f32[1,32], index: 4, kind: input, shape index: {}]   ;;  %s4135_s5 = inlined_call_operand.vmem [shape: f32[32,272], index: 5, kind: input, shape index: {}]   ;;  %s4136_s6 = inlined_call_operand.vmem [shape: f32[1,272], index: 6, kind: input, shape index: {}]   ;;  %s4137_s7 = inlined_call_operand.hbm [shape: f32[8,8,16], index: 7, kind: output, shape index: {0}]   ;;  %s4138_s8 = inlined_call_operand.hbm [shape: f32[8,32], index: 8, kind: output, shape index: {1}]   ;;  %s4139_s9 = inlined_call_operand.vmem [shape: f32[8,8,64], index: 9, kind: output, shape index: {2}]  }
   0x1   :  { %17 = vsyncpa [#allocation3 + $0x1], 0 }
   0x2   :  { %18 = vsyncpa [#allocation5], 0  ;;  %s3179_s30 = smov 0   ;;  %s3181_s10 = smov 0  }
   0x3   :  { %s3183_s11 = smov 0   ;;  %s3185_s12 = smov 0  }
   0x4 LB: > { %s3200_s13 = sadd.s32 4294967295, %s3118_s12   ;;  %s2528_s14 = sadd.s32 4294967294, %s3118_s12   ;;  %s3118_s12 = sphi %s3185_s12, %s4186_s12   ;;  %s3114_s11 = sphi %s3183_s11, %s4185_s11   ;;  %s3110_s10 = sphi %s3181_s10, %s4184_s10   ;;  %s3106_s30 = sphi %s3179_s30, %s4183_s30  }
   0x5   : > { %s3204_s15 = sadd.s32 1, %s3118_s12   ;;  %s183_s16 = sadd.s32 1, %s3114_s11 }
   0x6   : > { %s180_s17 = ssub.s32 %s3118_s12, %s3204_s15  ;;  %p193_p0 = scmp.ne.s32.totalorder %s3114_s11, %s3110_s10 }
   0x7   : > { %p181_p1 = scmp.eq.s32.totalorder %s180_s17, 0  ;;  %p194_p2 = scmp.eq.s32.totalorder %s3200_s13, 7 }
   0x8   : > { %p199_p3 = scmp.ne.s32.totalorder %s3110_s10, %s3106_s30  ;;  %p200_p4 = scmp.eq.s32.totalorder %s2528_s14, 7 }
   0x9   : > { %s3215_s18 = scalar_select %p181_p1, %s3114_s11, %s183_s16  }
   0xa   : > { %p3219_p5 = por %p194_p2, %p193_p0  ;;  %p3223_p6 = por %p200_p4, %p199_p3 }
   0xb   : > { %p2531_p7 = scmp.ge.s32.totalorder %s3118_s12, 1  ;;  %p285_p8 = scmp.lt.s32.totalorder %s3118_s12, 9 }
   0xd   : > { %p286_p9 = pnand %p2531_p7, %p285_p8 }
   0xe   : > { %s4140_s21 = sand.u32 (!%p286_p9), 1, %s3110_s10   ;;  %p320_p10 = scmp.lt.s32.totalorder (!%p286_p9), %s3200_s13, 7 }
   0xf   : > { %289 = sbr.rel (%p286_p9) target bundleno = 1688 (0x698), region = 48  ;;  %s3233_s22 = sshll.u32 (!%p286_p9), %s4140_s21, 3 }
  0x10   : > { %p2534_p11 = scmp.ne.s32.totalorder (!%p286_p9), %s3200_s13, 0 }
  0x16   : > { %s321_s23 = scalar_select %p320_p10, %s3200_s13, 7 }
  0x17   : > { %327 = sbr.rel (%p2534_p11) target bundleno = 30 (0x1e), region = 52  ;;  %v328_v0 = vld [vmem:[%s4131_s1] sm:$0xff] (!%p2534_p11)  ;;  %vm329_vm0 = vcmask (!%p2534_p11), 261120   ;;  %vm339_vm1 = vcmask (!%p2534_p11), 523264   ;;  %v332_v2 = vld [vmem:[%s4132_s2 + $0x8] sm:$0xff] (!%p2534_p11)  ;;  %v333_v3 = vld [vmem:[%s4132_s2 + $0x10] sm:$0xff] (!%p2534_p11) }
  0x18   : > { %s2533_s24 = sshll.u32 %s321_s23, 3  ;;  %v331_v1 = vld [vmem:[%s4132_s2] sm:$0xff] (!%p2534_p11)  ;;  %330 = vst.msk [vmem:[#allocation4] sm:$0xff] (!%p2534_p11), %vm329_vm0, %v328_v0  ;;  %v334_v4 = vld [vmem:[%s4132_s2 + $0x18] sm:$0xff] (!%p2534_p11)  ;;  %v336_v6 = vld [vmem:[%s4132_s2 + $0x28] sm:$0xff] (!%p2534_p11) }
  0x19   : > { %s3239_s27 = scalar_lea.vmem %s4130_s0, %s2533_s24  ;;  %340 = vst.msk [vmem:[%s4139_s9] sm:$0xff] (!%p2534_p11), %vm339_vm1, %v331_v1  ;;  %341 = vst.msk [vmem:[%s4139_s9 + $0x8] sm:$0xff] (!%p2534_p11), %vm339_vm1, %v332_v2  ;;  %v335_v5 = vld [vmem:[%s4132_s2 + $0x20] sm:$0xff] (!%p2534_p11)  ;;  %v337_v7 = vld [vmem:[%s4132_s2 + $0x30] sm:$0xff] (!%p2534_p11) }
  0x1a   : > { %342 = vst.msk [vmem:[%s4139_s9 + $0x10] sm:$0xff] (!%p2534_p11), %vm339_vm1, %v333_v3  ;;  %343 = vst.msk [vmem:[%s4139_s9 + $0x18] sm:$0xff] (!%p2534_p11), %vm339_vm1, %v334_v4  ;;  %v338_v8 = vld [vmem:[%s4132_s2 + $0x38] sm:$0xff] (!%p2534_p11) }
  0x1b   : > { %344 = vst.msk [vmem:[%s4139_s9 + $0x20] sm:$0xff] (!%p2534_p11), %vm339_vm1, %v335_v5  ;;  %345 = vst.msk [vmem:[%s4139_s9 + $0x28] sm:$0xff] (!%p2534_p11), %vm339_vm1, %v336_v6 }
  0x1c   : > { %346 = vst.msk [vmem:[%s4139_s9 + $0x30] sm:$0xff] (!%p2534_p11), %vm339_vm1, %v337_v7  ;;  %347 = vst.msk [vmem:[%s4139_s9 + $0x38] sm:$0xff] (!%p2534_p11), %vm339_vm1, %v338_v8 }
  0x1e PF: > { %s3120_s26 = smov 112   ;;  %s3121_s29 = smov 16   ;;  %v376_v12 = vld [vmem:[%s4133_s3] sm:$0xff]  ;;  %v377_v13 = vld [vmem:[%s4133_s3 + $0x8] sm:$0xff]  ;;  %v3122_v14 = vmov 0.0|0.0   ;;  %v378_v17 = vld [vmem:[%s4133_s3 + $0x10] sm:$0xff] }
  0x1f   : > { %v349_v10 = vld [vmem:[#allocation4] sm:$0xff]  ;;  %2706 = vmatprep.subr.bf16.mxu0 %v3122_v14  ;;  %v408_v15 = vand.u32 4294901760, %v376_v12  ;;  %v411_v16 = vand.u32 4294901760, %v377_v13  ;;  %v379_v18 = vld [vmem:[%s4133_s3 + $0x18] sm:$0xff]  ;;  %2640 = vmatprep.subr.bf16.mxu1 %v3122_v14  ;;  %v380_v19 = vld [vmem:[%s4133_s3 + $0x20] sm:$0xff]  ;;  %v414_v20 = vand.u32 4294901760, %v378_v17 }
  0x20   : > { %v351_v9 = vld [vmem:[%s4139_s9 + $0x8] sm:$0xff]  ;;  %v350_v11 = vld [vmem:[%s4139_s9] sm:$0xff]  ;;  %359 = vrot.lane.b32.xlu0 %v349_v10, %s3121_s29  ;;  %v417_v21 = vand.u32 4294901760, %v379_v18  ;;  %v420_v23 = vand.u32 4294901760, %v380_v19  ;;  %v382_v28 = vld [vmem:[%s4133_s3 + $0x30] sm:$0xff]  ;;  %s3123_s24 = smov 48  }
  0x21   : > { %367 = vrot.lane.b32.xlu1 %v351_v9, %s3120_s26  ;;  %v381_v22 = vld [vmem:[%s4133_s3 + $0x28] sm:$0xff]  ;;  %v3328_v24 = vsub.f32 %v376_v12, %v408_v15  ;;  %v3330_v25 = vsub.f32 %v377_v13, %v411_v16  ;;  %v3332_v26 = vpack.c.bf16 %v411_v16, %v408_v15  ;;  %v383_v29 = vld [vmem:[%s4133_s3 + $0x38] sm:$0xff]  ;;  %v3340_v30 = vsub.f32 %v378_v17, %v414_v20  ;;  %v384_v32 = vld [vmem:[%s4133_s3 + $0x40] sm:$0xff]  ;;  %s4158_s28 = smov 64   ;;  %s4179_s14 = scalar_lea.vmem [#allocation2], %s3233_s22 }
  0x22   : > { %v423_v27 = vand.u32 4294901760, %v381_v22  ;;  %v3342_v31 = vsub.f32 %v379_v18, %v417_v21  ;;  %v385_v33 = vld [vmem:[%s4133_s3 + $0x48] sm:$0xff]  ;;  %v386_v34 = vld [vmem:[%s4133_s3 + $0x50] sm:$0xff]  ;;  %v3356_v36 = vsub.f32 %v380_v19, %v420_v23  ;;  %v3360_v38 = vpack.c.bf16 %v417_v21, %v414_v20  ;;  %v387_v39 = vld [vmem:[%s4133_s3 + $0x58] sm:$0xff]  ;;  %s2539_s25 = sshll.u32 %s3200_s13, 7  ;;  %s4180_s26 = scalar_lea.vmem [#allocation2], %s3233_s22 }
  0x23   : > { %v2707_v35 = vpack.c.bf16 %v3330_v25, %v3328_v24  ;;  %2642 = vmatpush1.bf16.msra.mxu1 %v3332_v26  ;;  %v426_v40 = vand.u32 4294901760, %v382_v28  ;;  %v429_v41 = vand.u32 4294901760, %v383_v29  ;;  %v432_v43 = vand.u32 4294901760, %v384_v32  ;;  %v388_v46 = vld [vmem:[%s4133_s3 + $0x60] sm:$0xff]  ;;  %v389_v47 = vld [vmem:[%s4133_s3 + $0x68] sm:$0xff]  ;;  %v390_v49 = vld [vmem:[%s4133_s3 + $0x70] sm:$0xff]  ;;  %s4015_s17 = scalar_lea.hbm %s4137_s7, %s2539_s25 }
  0x24   : > { %363 = vrot.lane.b32.xlu0 %v350_v11, %s3123_s24  ;;  %v3358_v37 = vsub.f32 %v381_v22, %v423_v27  ;;  %2643 = vmatprep.subr.bf16.mxu1 %v3122_v14  ;;  %v2710_v42 = vpack.c.bf16 %v3342_v31, %v3340_v30  ;;  %v435_v44 = vand.u32 4294901760, %v385_v33  ;;  %v438_v45 = vand.u32 4294901760, %v386_v34  ;;  %v391_v50 = vld [vmem:[%s4133_s3 + $0x78] sm:$0xff]  ;;  %v392_v59 = vld [vmem:[%s4133_s3 + $0x80] sm:$0xff]  ;;  %v393_v0 = vld [vmem:[%s4133_s3 + $0x88] sm:$0xff]  ;;  %s2441_s29 = sshll.u32 %s4180_s26, 4  ;;  %s4019_s29 = int_to_ptr.vmem [resolvable:$true] %s2441_s29 }
  0x25   : > { %2708 = vmatpush1.bf16.msra.mxu0 %v2707_v35  ;;  %v441_v48 = vand.u32 4294901760, %v387_v39  ;;  %v3384_v52 = vsub.f32 %v382_v28, %v426_v40  ;;  %v3386_v53 = vsub.f32 %v383_v29, %v429_v41  ;;  %v3388_v54 = vpack.c.bf16 %v423_v27, %v420_v23  ;;  %v3408_v1 = vld [vmem:[%s4133_s3 + $0x90] sm:$0xff]  ;;  %v3427_v10 = vld [vmem:[%s4133_s3 + $0x98] sm:$0xff]  ;;  %v3444_v19 = vld [vmem:[%s4133_s3 + $0xa0] sm:$0xff]  ;;  %s3127_s21 = smov [#allocation4]   ;;  %s4181_s22 = sand.u32 1, %s3110_s10  }
  0x26   : > { %2709 = vmatprep.subr.bf16.mxu0 %v3122_v14  ;;  %v2713_v51 = vpack.c.bf16 %v3358_v37, %v3356_v36  ;;  %v3391_v55 = vsub.f32 %v384_v32, %v432_v43  ;;  %v3393_v56 = vsub.f32 %v385_v33, %v435_v44  ;;  %v444_v57 = vand.u32 4294901760, %v388_v46  ;;  %v3462_v29 = vld [vmem:[%s4133_s3 + $0xa8] sm:$0xff]  ;;  %s2428_s23 = scalar_lea.sflag [#allocation3], %s4181_s22  ;;  %s3026_s24 = scalar_lea.vmem %s4019_s29, 128 }
  0x27   : > { %2645 = vmatpush1.bf16.msra.mxu1 %v3360_v38  ;;  %v447_v58 = vand.u32 4294901760, %v389_v47  ;;  %v3398_v60 = vsub.f32 %v386_v34, %v438_v45  ;;  %v3400_v61 = vsub.f32 %v387_v39, %v441_v48  ;;  %v450_v62 = vand.u32 4294901760, %v390_v49  ;;  %p3027_p12 = scmp.ne.s32.totalorder %s4019_s29, %s3026_s24  ;;  %s3128_s25 = smov [#allocation2]  }
  0x28   : > { %2646 = vmatprep.subr.bf16.mxu1 %v3122_v14  ;;  %v453_v63 = vand.u32 4294901760, %v391_v50  ;;  %v512_v2 = vand.u32 4294901760, %v3328_v24  ;;  %v519_v3 = vand.u32 4294901760, %v3330_v25  ;;  %v3413_v4 = vsub.f32 %v388_v46, %v444_v57  ;;  %s3030_s26 = sshll.u32 %s3128_s25, 4  ;;  %s3031_s26 = int_to_ptr.vmem [resolvable:$false] %s3030_s26 }
  0x29   : > { %2711 = vmatpush1.bf16.msra.mxu0 %v2710_v42  ;;  %v3415_v5 = vsub.f32 %v389_v47, %v447_v58  ;;  %v3418_v6 = vpack.c.bf16 %v429_v41, %v426_v40  ;;  %v3420_v7 = vsub.f32 %v390_v49, %v450_v62  ;;  %v456_v9 = vand.u32 4294901760, %v392_v59  ;;  %p3028_p13 = pnand %p3027_p12, %p3219_p5  ;;  %p3033_p1 = scmp.lt.s32.totalorder %s4019_s29, %s3031_s26 }
  0x2a   : > { %2712 = vmatprep.subr.bf16.mxu0 %v3122_v14  ;;  %v3422_v8 = vsub.f32 %v391_v50, %v453_v63  ;;  %v3430_v11 = vpack.c.bf16 %v435_v44, %v432_v43  ;;  %v459_v12 = vand.u32 4294901760, %v393_v0  ;;  %v462_v13 = vand.u32 4294901760, %v3408_v1 }
  0x2b   : > { %2648 = vmatpush1.bf16.msra.mxu1 %v3388_v54  ;;  %v2716_v15 = vpack.c.bf16 %v3386_v53, %v3384_v52  ;;  %v2719_v16 = vpack.c.bf16 %v3393_v56, %v3391_v55  ;;  %v2722_v17 = vpack.c.bf16 %v3400_v61, %v3398_v60  ;;  %v3439_v18 = vpack.c.bf16 %v441_v48, %v438_v45  ;;  %p3029_p0 = pneg %p3028_p13 }
  0x2c   : > { %2649 = vmatprep.subr.bf16.mxu1 %v3122_v14  ;;  %v2725_v20 = vpack.c.bf16 %v3415_v5, %v3413_v4  ;;  %v3449_v21 = vpack.c.bf16 %v447_v58, %v444_v57  ;;  %v3451_v22 = vpack.c.bf16 %v453_v63, %v450_v62  ;;  %v465_v23 = vand.u32 4294901760, %v3427_v10 }
  0x2d   : > { %2714 = vmatpush1.bf16.msra.mxu0 %v2713_v51  ;;  %v2728_v27 = vpack.c.bf16 %v3422_v8, %v3420_v7  ;;  %v3457_v28 = vsub.f32 %v392_v59, %v456_v9  ;;  %v513_v32 = vsub.f32 %v3328_v24, %v512_v2  ;;  %v520_v33 = vsub.f32 %v3330_v25, %v519_v3 }
  0x2e   : > { %2715 = vmatprep.subr.bf16.mxu0 %v3122_v14  ;;  %v3471_v34 = vsub.f32 %v393_v0, %v459_v12  ;;  %v3476_v35 = vsub.f32 %v3408_v1, %v462_v13  ;;  %v3478_v39 = vpack.c.bf16 %v459_v12, %v456_v9  ;;  %v4156_v40 = vand.u32 4294901760, %v3444_v19 }
  0x2f   : > { %2651 = vmatpush1.bf16.msra.mxu1 %v3418_v6  ;;  %v514_v41 = vand.u32 4294901760, %v513_v32  ;;  %v521_v42 = vand.u32 4294901760, %v520_v33  ;;  %v4155_v43 = vand.u32 4294901760, %v3340_v30  ;;  %v4153_v44 = vand.u32 4294901760, %v3342_v31 }
  0x30   : > { %2652 = vmatprep.subr.bf16.mxu1 %v3122_v14  ;;  %v4157_v45 = vand.u32 4294901760, %v3462_v29  ;;  %v4152_v46 = vand.u32 4294901760, %v3356_v36  ;;  %v4151_v47 = vand.u32 4294901760, %v3358_v37  ;;  %v4143_v48 = vand.u32 4294901760, %v3384_v52 }
  0x31   : > { %2717 = vmatpush1.bf16.msra.mxu0 %v2716_v15  ;;  %v3489_v49 = vpack.c.bf16 %v521_v42, %v514_v41  ;;  %v527_v50 = vsub.f32 %v3340_v30, %v4155_v43  ;;  %v534_v51 = vsub.f32 %v3342_v31, %v4153_v44  ;;  %v4141_v57 = vand.u32 4294901760, %v3386_v53 }
  0x32   : > { %2718 = vmatprep.subr.bf16.mxu0 %v3122_v14  ;;  %v541_v58 = vsub.f32 %v3356_v36, %v4152_v46  ;;  %v548_v59 = vsub.f32 %v3358_v37, %v4151_v47  ;;  %v555_v62 = vsub.f32 %v3384_v52, %v4143_v48  ;;  %v4142_v63 = vand.u32 4294901760, %v3391_v55 }
  0x33   : > { %2654 = vmatpush1.bf16.msra.mxu1 %v3430_v11  ;;  %v528_v0 = vand.u32 4294901760, %v527_v50  ;;  %v535_v9 = vand.u32 4294901760, %v534_v51  ;;  %v562_v12 = vsub.f32 %v3386_v53, %v4141_v57  ;;  %v4146_v15 = vand.u32 4294901760, %v3393_v56 }
  0x34   : > { %2655 = vmatprep.subr.bf16.mxu1 %v3122_v14  ;;  %v542_v32 = vand.u32 4294901760, %v541_v58  ;;  %v549_v33 = vand.u32 4294901760, %v548_v59  ;;  %v556_v41 = vand.u32 4294901760, %v555_v62  ;;  %v569_v42 = vsub.f32 %v3391_v55, %v4142_v63 }
  0x35   : > { %2720 = vmatpush1.bf16.msra.mxu0 %v2719_v16  ;;  %v3518_v16 = vpack.c.bf16 %v535_v9, %v528_v0  ;;  %v563_v50 = vand.u32 4294901760, %v562_v12  ;;  %v576_v51 = vsub.f32 %v3393_v56, %v4146_v15  ;;  %v4144_v57 = vand.u32 4294901760, %v3398_v60 }
  0x36   : > { %2721 = vmatprep.subr.bf16.mxu0 %v3122_v14  ;;  %v3525_v58 = vpack.c.bf16 %v549_v33, %v542_v32  ;;  %v570_v59 = vand.u32 4294901760, %v569_v42  ;;  %v4145_v62 = vand.u32 4294901760, %v3400_v61  ;;  %v4147_v63 = vand.u32 4294901760, %v3413_v4 }
  0x37   : > { %2657 = vmatpush1.bf16.msra.mxu1 %v3439_v18  ;;  %v3529_v48 = vpack.c.bf16 %v563_v50, %v556_v41  ;;  %v577_v0 = vand.u32 4294901760, %v576_v51  ;;  %v583_v9 = vsub.f32 %v3398_v60, %v4144_v57  ;;  %v4150_v12 = vand.u32 4294901760, %v3415_v5 }
  0x38   : > { %2658 = vmatprep.subr.bf16.mxu1 %v3122_v14  ;;  %v590_v32 = vsub.f32 %v3400_v61, %v4145_v62  ;;  %v597_v33 = vsub.f32 %v3413_v4, %v4147_v63  ;;  %v4149_v41 = vand.u32 4294901760, %v3422_v8  ;;  %v4154_v57 = vand.u32 4294901760, %v3457_v28 }
  0x39   : > { %2723 = vmatpush1.bf16.msra.mxu0 %v2722_v17  ;;  %v4148_v17 = vand.u32 4294901760, %v3420_v7  ;;  %v3545_v42 = vpack.c.bf16 %v577_v0, %v570_v59  ;;  %v584_v50 = vand.u32 4294901760, %v583_v9  ;;  %v604_v51 = vsub.f32 %v3415_v5, %v4150_v12 }
  0x3a   : > { %2724 = vmatprep.subr.bf16.mxu0 %v3122_v14  ;;  %v591_v62 = vand.u32 4294901760, %v590_v32  ;;  %v598_v15 = vand.u32 4294901760, %v597_v33  ;;  %v618_v59 = vsub.f32 %v3422_v8, %v4149_v41  ;;  %v644_v0 = vsub.f32 %v3427_v10, %v465_v23 }
  0x3b   : > { %2660 = vmatpush1.bf16.msra.mxu1 %v3449_v21  ;;  %v611_v63 = vsub.f32 %v3420_v7, %v4148_v17  ;;  %v605_v9 = vand.u32 4294901760, %v604_v51  ;;  %v625_v32 = vsub.f32 %v3457_v28, %v4154_v57  ;;  %v631_v33 = vand.u32 4294901760, %v3471_v34 }
  0x3c   : > { %2661 = vmatprep.subr.bf16.mxu1 %v3122_v14  ;;  %v3569_v17 = vpack.c.bf16 %v591_v62, %v584_v50  ;;  %v619_v12 = vand.u32 4294901760, %v618_v59  ;;  %v638_v47 = vand.u32 4294901760, %v3476_v35  ;;  %v645_v44 = vand.u32 4294901760, %v644_v0 }
  0x3d   : > { %2726 = vmatpush1.bf16.msra.mxu0 %v2725_v20  ;;  %v612_v41 = vand.u32 4294901760, %v611_v63  ;;  %v3573_v20 = vpack.c.bf16 %v605_v9, %v598_v15  ;;  %v626_v46 = vand.u32 4294901760, %v625_v32  ;;  %v632_v51 = vsub.f32 %v3471_v34, %v631_v33 }
  0x3e   : > { %2727 = vmatprep.subr.bf16.mxu0 %v3122_v14  ;;  %v651_v57 = vsub.f32 %v3444_v19, %v4156_v40  ;;  %v658_v63 = vsub.f32 %v3462_v29, %v4157_v45  ;;  %v639_v50 = vsub.f32 %v3476_v35, %v638_v47  ;;  %v2731_v15 = vpack.c.bf16 %v3471_v34, %v3457_v28 }
  0x3f   : > { %2663 = vmatpush1.bf16.msra.mxu1 %v3451_v22  ;;  %v3583_v62 = vpack.c.bf16 %v619_v12, %v612_v41  ;;  %v633_v59 = vand.u32 4294901760, %v632_v51  ;;  %v646_v9 = vsub.f32 %v644_v0, %v645_v44  ;;  %v3597_v12 = vpack.c.bf16 %v465_v23, %v462_v13 }
  0x40   : > { %2664 = vmatprep.subr.bf16.mxu1 %v3122_v14  ;;  %v640_v32 = vand.u32 4294901760, %v639_v50  ;;  %v652_v43 = vand.u32 4294901760, %v651_v57  ;;  %v659_v40 = vand.u32 4294901760, %v658_v63  ;;  %v2734_v50 = vpack.c.bf16 %v644_v0, %v3476_v35 }
  0x41   : > { %2729 = vmatpush1.bf16.msra.mxu0 %v2728_v27  ;;  %v3599_v41 = vpack.c.bf16 %v633_v59, %v626_v46  ;;  %v647_v27 = vand.u32 4294901760, %v646_v9  ;;  %v3610_v1 = vpack.c.bf16 %v519_v3, %v512_v2  ;;  %v4162_v23 = vand.u32 4294901760, %v3444_v19 }
  0x42   : > { %2730 = vmatprep.subr.bf16.mxu0 %v3122_v14  ;;  %v653_v34 = vsub.f32 %v651_v57, %v652_v43  ;;  %v660_v51 = vsub.f32 %v658_v63, %v659_v40  ;;  %v4163_v46 = vand.u32 4294901760, %v3462_v29  ;;  %v2737_v24 = vpack.c.bf16 %v658_v63, %v651_v57 }
  0x43   : > { %2666 = vmatpush1.bf16.msra.mxu1 %v3478_v39  ;;  %v3603_v45 = vpack.c.bf16 %v647_v27, %v640_v32  ;;  %v4164_v25 = vand.u32 4294901760, %v3340_v30  ;;  %v4165_v2 = vand.u32 4294901760, %v3342_v31  ;;  %v4166_v19 = vand.u32 4294901760, %v3356_v36 }
  0x44   : > { %2667 = vmatprep.subr.bf16.mxu1 %v3122_v14  ;;  %v654_v10 = vand.u32 4294901760, %v653_v34  ;;  %v661_v13 = vand.u32 4294901760, %v660_v51  ;;  %v4167_v29 = vand.u32 4294901760, %v3358_v37  ;;  %v4168_v30 = vand.u32 4294901760, %v3384_v52 }
  0x45   : > { %2732 = vmatpush1.bf16.msra.mxu0 %v2731_v15  ;;  %v3617_v15 = vpack.c.bf16 %v4163_v46, %v4162_v23  ;;  %v3627_v3 = vpack.c.bf16 %v4165_v2, %v4164_v25  ;;  %v4169_v31 = vand.u32 4294901760, %v3386_v53  ;;  %v4170_v63 = vand.u32 4294901760, %v3391_v55 }
  0x46   : > { %2733 = vmatprep.subr.bf16.mxu0 %v3122_v14  ;;  %v3620_v35 = vpack.c.bf16 %v661_v13, %v654_v10  ;;  %v3635_v0 = vpack.c.bf16 %v4167_v29, %v4166_v19  ;;  %v4171_v59 = vand.u32 4294901760, %v3393_v56  ;;  %v4172_v36 = vand.u32 4294901760, %v3398_v60  ;;  %v348_v13 = vld [vmem:[%s3239_s27] sm:$0xff]  ;;  %s4021_s27 = sshll.u32 %s3127_s21, 4  ;;  %s2453_s27 = int_to_ptr.vmem [resolvable:$true] %s4021_s27 }
  0x47   : > { %2669 = vmatpush1.bf16.msra.mxu1 %v3597_v12  ;;  %v3642_v57 = vpack.c.bf16 %v4169_v31, %v4168_v30  ;;  %v4173_v37 = vand.u32 4294901760, %v3400_v61  ;;  %v4174_v27 = vand.u32 4294901760, %v3413_v4  ;;  %v4175_v52 = vand.u32 4294901760, %v3415_v5 }
  0x48   : > { %2670 = vmatprep.subr.bf16.mxu1 %v3122_v14  ;;  %v3648_v9 = vpack.c.bf16 %v4171_v59, %v4170_v63  ;;  %v4176_v53 = vand.u32 4294901760, %v3420_v7  ;;  %v4177_v55 = vand.u32 4294901760, %v3422_v8  ;;  %v4178_v56 = vand.u32 4294901760, %v3457_v28 }
  0x49   : > { %2735 = vmatpush1.bf16.msra.mxu0 %v2734_v50  ;;  %v3654_v32 = vpack.c.bf16 %v4173_v37, %v4172_v36  ;;  %v3660_v34 = vpack.c.bf16 %v4175_v52, %v4174_v27  ;;  %v3672_v60 = vpack.c.bf16 %v645_v44, %v638_v47  ;;  %v3674_v61 = vpack.c.bf16 %v659_v40, %v652_v43 }
  0x4a   : > { %2736 = vmatprep.subr.bf16.mxu0 %v3122_v14  ;;  %v3666_v51 = vpack.c.bf16 %v4177_v55, %v4176_v53  ;;  %v3670_v50 = vpack.c.bf16 %v631_v33, %v4178_v56  ;;  %vm372_vm2 = vcmask 392192   ;;  %vm370_vm3 = vcmask 130048  }
  0x4b   : > { %2672 = vmatpush1.bf16.msra.mxu1 %v3617_v15  ;;  %vm374_vm4 = vcmask 916480   ;;  %vm1174_vm5 = vcmask 261120   ;;  %vm3125_vm6 = vmmov 0  }
  0x4c   : > { %2673 = vmatprep.subr.bf16.mxu1 %v3122_v14 }
  0x4d   : > { %2738 = vmatpush1.bf16.msra.mxu0 %v2737_v24 }
  0x4e   : > { %2739 = vmatprep.subr.bf16.mxu0 %v3122_v14 }
  0x92   : > { %v360_v10 = vpop.permute.xlu0 %359 }
  0x93   : > { %v368_v4 = vpop.permute.xlu1 %367  ;;  %v371_v8 = vsel %vm370_vm3, %v348_v13, %v360_v10 }
  0x94   : > { %v405_v5 = vsel %vm372_vm2, %v368_v4, 0 }
  0x95   : > { %v3677_v23 = vand.u32 4294901760, %v405_v5 }
  0x96   : > { %v364_v28 = vpop.permute.xlu0 %363 }
  0x97   : > { %v494_v7 = vsub.f32 %v405_v5, %v3677_v23  ;;  %v373_v33 = vsel %vm372_vm2, %v371_v8, %v364_v28 }
  0x98   : > { %v375_v46 = vsel %vm374_vm4, %v373_v33, %v368_v4 }
  0x99   : > { %801 = vmatprep.mubr.f32.mxu0 %v494_v7  ;;  %v495_v44 = vand.u32 4294901760, %v494_v7  ;;  %v3681_v40 = vand.u32 4294901760, %v375_v46 }
  0x9b   : > { %v496_v43 = vsub.f32 %v494_v7, %v495_v44  ;;  %v500_v47 = vsub.f32 %v375_v46, %v3681_v40 }
  0x9d   : > { %v497_v24 = vand.u32 4294901760, %v496_v43  ;;  %804 = vmatmul.mubr.f32.vlgmr.msra.gmra.mrb[0].mxu0 %v500_v47  ;;  %v501_v25 = vand.u32 4294901760, %v500_v47 }
  0x9e   : > { %2741 = vmatpush1.bf16.msra.mxu0 %v3332_v26  ;;  %898 = vmatprep.mubr.f32.mxu0 %v495_v44 }
  0x9f   : > { %498 = vmatprep.mubr.f32.mxu1 %v497_v24  ;;  %2742 = vmatprep.subr.bf16.mxu0 %v3122_v14  ;;  %v502_v2 = vsub.f32 %v500_v47, %v501_v25 }
  0xa1   : > { %v503_v19 = vand.u32 4294901760, %v502_v2 }
  0xa2   : > { %2744 = vmatpush1.bf16.msra.mxu0 %v3360_v38 }
  0xa3   : > { %504 = vmatmul.mubr.f32.vlgmr.msra.gmra.mrb[0].mxu1 %v503_v19  ;;  %2745 = vmatprep.subr.bf16.mxu0 %v3122_v14 }
  0xa4   : > { %2675 = vmatpush1.bf16.msra.mxu1 %v3489_v49  ;;  %684 = vmatprep.mubr.f32.mxu1 %v3677_v23 }
  0xa5   : > { %2676 = vmatprep.subr.bf16.mxu1 %v3122_v14 }
  0xa6   : > { %2747 = vmatpush1.bf16.msra.mxu0 %v3388_v54 }
  0xa7   : > { %2748 = vmatprep.subr.bf16.mxu0 %v3122_v14 }
  0xa8   : > { %2678 = vmatpush1.bf16.msra.mxu1 %v3518_v16 }
  0xa9   : > { %2679 = vmatprep.subr.bf16.mxu1 %v3122_v14 }
  0xaa   : > { %2750 = vmatpush1.bf16.msra.mxu0 %v3418_v6 }
  0xab   : > { %2751 = vmatprep.subr.bf16.mxu0 %v3122_v14 }
  0xac   : > { %2681 = vmatpush1.bf16.msra.mxu1 %v3525_v58 }
  0xad   : > { %2682 = vmatprep.subr.bf16.mxu1 %v3122_v14 }
  0xae   : > { %2753 = vmatpush1.bf16.msra.mxu0 %v3430_v11 }
  0xaf   : > { %2754 = vmatprep.subr.bf16.mxu0 %v3122_v14 }
  0xb0   : > { %2684 = vmatpush1.bf16.msra.mxu1 %v3529_v48 }
  0xb1   : > { %2685 = vmatprep.subr.bf16.mxu1 %v3122_v14 }
  0xb2   : > { %2756 = vmatpush1.bf16.msra.mxu0 %v3439_v18 }
  0xb3   : > { %2757 = vmatprep.subr.bf16.mxu0 %v3122_v14 }
  0xb4   : > { %2687 = vmatpush1.bf16.msra.mxu1 %v3545_v42  ;;  %v1155_v42 = vld [vmem:[%s4135_s5 + $0x50] sm:$0xff] }
  0xb5   : > { %2688 = vmatprep.subr.bf16.mxu1 %v3122_v14 }
  0xb6   : > { %2759 = vmatpush1.bf16.msra.mxu0 %v3449_v21 }
  0xb7   : > { %2760 = vmatprep.subr.bf16.mxu0 %v3122_v14 }
  0xb8   : > { %2690 = vmatpush1.bf16.msra.mxu1 %v3569_v17  ;;  %v1152_v17 = vld [vmem:[%s4135_s5 + $0x38] sm:$0xff] }
  0xb9   : > { %2691 = vmatprep.subr.bf16.mxu1 %v3122_v14 }
  0xba   : > { %2762 = vmatpush1.bf16.msra.mxu0 %v3451_v22 }
  0xbb   : > { %2763 = vmatprep.subr.bf16.mxu0 %v3122_v14 }
  0xbc   : > { %2693 = vmatpush1.bf16.msra.mxu1 %v3573_v20  ;;  %v1151_v20 = vld [vmem:[%s4135_s5 + $0x30] sm:$0xff] }
  0xbd   : > { %2694 = vmatprep.subr.bf16.mxu1 %v3122_v14 }
  0xbe   : > { %2765 = vmatpush1.bf16.msra.mxu0 %v3478_v39 }
  0xbf   : > { %2766 = vmatprep.subr.bf16.mxu0 %v3122_v14 }
  0xc0   : > { %2696 = vmatpush1.bf16.msra.mxu1 %v3583_v62  ;;  %v1186_v62 = vand.u32 4294901760, %v1152_v17 }
  0xc1   : > { %2697 = vmatprep.subr.bf16.mxu1 %v3122_v14 }
  0xc2   : > { %2768 = vmatpush1.bf16.msra.mxu0 %v3597_v12 }
  0xc3   : > { %2769 = vmatprep.subr.bf16.mxu0 %v3122_v14 }
  0xc4   : > { %2699 = vmatpush1.bf16.msra.mxu1 %v3599_v41  ;;  %v1154_v41 = vld [vmem:[%s4135_s5 + $0x48] sm:$0xff] }
  0xc5   : > { %2700 = vmatprep.subr.bf16.mxu1 %v3122_v14 }
  0xc6   : > { %2771 = vmatpush1.bf16.msra.mxu0 %v3617_v15 }
  0xc7   : > { %2772 = vmatprep.subr.bf16.mxu0 %v3122_v14 }
  0xc8   : > { %2702 = vmatpush1.bf16.msra.mxu1 %v3603_v45 }
  0xc9   : > { %902 = vmatmul.mubr.f32.vlgmr.msra.gmra.mrb[0].mxu0 %v501_v25  ;;  %2703 = vmatprep.subr.bf16.mxu1 %v3122_v14 }
  0xca   : > { %2774 = vmatpush1.bf16.msra.mxu0 %v3610_v1  ;;  %1038 = vmatprep.mubr.f32.mxu0 %v3677_v23  ;;  %v1188_v1 = vand.u32 4294901760, %v1151_v20 }
  0xcb   : > { %2775 = vmatprep.subr.bf16.mxu0 %v3122_v14 }
  0xcc   : > { %2705 = vmatpush1.bf16.msra.mxu1 %v3620_v35  ;;  %v3825_v59 = vsub.f32 %v1151_v20, %v1188_v1 }
  0xce   : > { %2777 = vmatpush1.bf16.msra.mxu0 %v3627_v3  ;;  %v1192_v3 = vand.u32 4294901760, %v1154_v41 }
  0xcf   : > { %686 = vmatmul.mubr.f32.vlgmr.msra.gmra.mrb[0].mxu1 %v3681_v40  ;;  %2778 = vmatprep.subr.bf16.mxu0 %v3122_v14 }
  0xd0   : > { %v3829_v36 = vsub.f32 %v1154_v41, %v1192_v3 }
  0xd2   : > { %2780 = vmatpush1.bf16.msra.mxu0 %v3635_v0  ;;  %v2860_v19 = vpack.c.bf16 %v3829_v36, %v3825_v59 }
  0xd3   : > { %2781 = vmatprep.subr.bf16.mxu0 %v3122_v14 }
  0xd6   : > { %2783 = vmatpush1.bf16.msra.mxu0 %v3642_v57  ;;  %v3821_v57 = vsub.f32 %v1152_v17, %v1186_v62 }
  0xd7   : > { %2784 = vmatprep.subr.bf16.mxu0 %v3122_v14 }
  0xd8   : > { %v1288_v55 = vand.u32 4294901760, %v3821_v57 }
  0xda   : > { %2786 = vmatpush1.bf16.msra.mxu0 %v3648_v9  ;;  %v3827_v9 = vpack.c.bf16 %v1192_v3, %v1188_v1  ;;  %v1289_v10 = vsub.f32 %v3821_v57, %v1288_v55  ;;  %v1150_v3 = vld [vmem:[%s4135_s5 + $0x28] sm:$0xff] }
  0xdb   : > { %2787 = vmatprep.subr.bf16.mxu0 %v3122_v14 }
  0xdc   : > { %v1290_v8 = vand.u32 4294901760, %v1289_v10 }
  0xde   : > { %2789 = vmatpush1.bf16.msra.mxu0 %v3654_v32 }
  0xdf   : > { %2790 = vmatprep.subr.bf16.mxu0 %v3122_v14 }
  0xe2   : > { %2792 = vmatpush1.bf16.msra.mxu0 %v3660_v34 }
  0xe3   : > { %2793 = vmatprep.subr.bf16.mxu0 %v3122_v14 }
  0xe6   : > { %2795 = vmatpush1.bf16.msra.mxu0 %v3666_v51 }
  0xe7   : > { %2796 = vmatprep.subr.bf16.mxu0 %v3122_v14 }
  0xea   : > { %2798 = vmatpush1.bf16.msra.mxu0 %v3670_v50 }
  0xeb   : > { %2799 = vmatprep.subr.bf16.mxu0 %v3122_v14 }
  0xee   : > { %2801 = vmatpush1.bf16.msra.mxu0 %v3672_v60  ;;  %v1294_v60 = vand.u32 4294901760, %v3825_v59 }
  0xef   : > { %2802 = vmatprep.subr.bf16.mxu0 %v3122_v14 }
  0xf2   : > { %2804 = vmatpush1.bf16.msra.mxu0 %v3674_v61  ;;  %v1306_v61 = vand.u32 4294901760, %v3829_v36 }
  0xf3   : > { %2805 = vmatprep.subr.bf16.mxu0 %v3122_v14 }
  0xf4   : > { %v1307_v7 = vsub.f32 %v3829_v36, %v1306_v61 }
  0xf5   : > { %1040 = vmatmul.mubr.f32.vlgmr.msra.gmra.mrb[0].mxu0 %v3681_v40 }
  0xf6   : > { %2807 = vmatpush1.bf16.msra.mxu0 %v3332_v26  ;;  %1132 = vmatprep.mubr.f32.mxu0 %v3677_v23  ;;  %v1146_v26 = vld [vmem:[%s4135_s5 + $0x8] sm:$0xff]  ;;  %v1295_v23 = vsub.f32 %v3825_v59, %v1294_v60  ;;  %v1308_v46 = vand.u32 4294901760, %v1307_v7 }
  0xf7   : > { %2808 = vmatprep.subr.bf16.mxu0 %v3122_v14 }
  0xf8   : > { %v1296_v33 = vand.u32 4294901760, %v1295_v23 }
  0xfa   : > { %2810 = vmatpush1.bf16.msra.mxu0 %v3360_v38  ;;  %v1149_v38 = vld [vmem:[%s4135_s5 + $0x20] sm:$0xff] }
  0xfb   : > { %2811 = vmatprep.subr.bf16.mxu0 %v3122_v14 }
  0xfe   : > { %2813 = vmatpush1.bf16.msra.mxu0 %v3388_v54  ;;  %v1178_v54 = vand.u32 4294901760, %v1146_v26 }
  0xff   : > { %2814 = vmatprep.subr.bf16.mxu0 %v3122_v14 }
 0x100   : > { %v3790_v45 = vsub.f32 %v1146_v26, %v1178_v54 }
 0x102   : > { %2816 = vmatpush1.bf16.msra.mxu0 %v3418_v6  ;;  %v1182_v6 = vand.u32 4294901760, %v1149_v38  ;;  %v1264_v35 = vand.u32 4294901760, %v3790_v45 }
 0x103   : > { %2817 = vmatprep.subr.bf16.mxu0 %v3122_v14 }
 0x104   : > { %v3792_v48 = vsub.f32 %v1149_v38, %v1182_v6  ;;  %v1265_v37 = vsub.f32 %v3790_v45, %v1264_v35 }
 0x106   : > { %2819 = vmatpush1.bf16.msra.mxu0 %v3430_v11  ;;  %v1145_v11 = vld [vmem:[%s4135_s5] sm:$0xff]  ;;  %v1276_v29 = vand.u32 4294901760, %v3792_v48  ;;  %v1266_v34 = vand.u32 4294901760, %v1265_v37  ;;  %v2854_v43 = vpack.c.bf16 %v3792_v48, %v3790_v45 }
 0x107   : > { %2820 = vmatprep.subr.bf16.mxu0 %v3122_v14 }
 0x108   : > { %v1277_v32 = vsub.f32 %v3792_v48, %v1276_v29  ;;  %v2870_v26 = vpack.c.bf16 %v1276_v29, %v1264_v35  ;;  %v1147_v35 = vld [vmem:[%s4135_s5 + $0x10] sm:$0xff] }
 0x109   : > { %v1722_v29 = vand.u32 4294901760, %v1147_v35 }
 0x10a   : > { %2822 = vmatpush1.bf16.msra.mxu0 %v3439_v18  ;;  %v1148_v18 = vld [vmem:[%s4135_s5 + $0x18] sm:$0xff]  ;;  %v1278_v53 = vand.u32 4294901760, %v1277_v32 }
 0x10b   : > { %2823 = vmatprep.subr.bf16.mxu0 %v3122_v14 }
 0x10c   : > { %v2846_v4 = vpack.c.bf16 %v1278_v53, %v1266_v34 }
 0x10e   : > { %2825 = vmatpush1.bf16.msra.mxu0 %v3449_v21  ;;  %v1180_v21 = vand.u32 4294901760, %v1145_v11 }
 0x10f   : > { %2826 = vmatprep.subr.bf16.mxu0 %v3122_v14 }
 0x110   : > { %v3796_v16 = vsub.f32 %v1145_v11, %v1180_v21  ;;  %v2535_v11 = vld [vmem:[%s4134_s4] ss:$0 sm:$0xff] }
 0x112   : > { %2828 = vmatpush1.bf16.msra.mxu0 %v3451_v22  ;;  %v1184_v22 = vand.u32 4294901760, %v1148_v18  ;;  %v1270_v0 = vand.u32 4294901760, %v3796_v16 }
 0x113   : > { %2829 = vmatprep.subr.bf16.mxu0 %v3122_v14 }
 0x114   : > { %v3794_v49 = vpack.c.bf16 %v1184_v22, %v1180_v21  ;;  %v3798_v58 = vsub.f32 %v1148_v18, %v1184_v22  ;;  %v1271_v27 = vsub.f32 %v3796_v16, %v1270_v0 }
 0x116   : > { %2831 = vmatpush1.bf16.msra.mxu0 %v3478_v39  ;;  %v3788_v39 = vpack.c.bf16 %v1182_v6, %v1178_v54  ;;  %v1282_v30 = vand.u32 4294901760, %v3798_v58  ;;  %v1272_v56 = vand.u32 4294901760, %v1271_v27  ;;  %v2856_v25 = vpack.c.bf16 %v3798_v58, %v3796_v16 }
 0x117   : > { %2832 = vmatprep.subr.bf16.mxu0 %v3122_v14  ;;  %v2876_v6 = vpack.c.bf16 %v1306_v61, %v1294_v60 }
 0x118   : > { %2839 = vmatprep.subr.bf16.mxu1 %v3788_v39  ;;  %v1283_v52 = vsub.f32 %v3798_v58, %v1282_v30  ;;  %v2872_v38 = vpack.c.bf16 %v1282_v30, %v1270_v0  ;;  %v1725_v0 = vand.u32 4294901760, %v1150_v3  ;;  %v1153_v30 = vld [vmem:[%s4135_s5 + $0x40] sm:$0xff] }
 0x119   : > { %2841 = vmatpush1.bf16.msra.mxu1 %v3794_v49  ;;  %v1728_v36 = vand.u32 4294901760, %v1153_v30 }
 0x11a   : > { %2834 = vmatpush1.bf16.msra.mxu0 %v3597_v12  ;;  %v1190_v12 = vand.u32 4294901760, %v1155_v42  ;;  %v1284_v50 = vand.u32 4294901760, %v1283_v52  ;;  %v1809_v59 = vsub.f32 %v1150_v3, %v1725_v0  ;;  %v2887_v53 = vpack.c.bf16 %v1725_v0, %v1722_v29  ;;  %v352_v0 = vld [vmem:[%s4139_s9 + $0x10] sm:$0xff] }
 0x11b   : > { %2835 = vmatprep.subr.bf16.mxu0 %v3122_v14  ;;  %v1816_v32 = vsub.f32 %v1153_v30, %v1728_v36  ;;  %v354_v30 = vld [vmem:[%s4139_s9 + $0x20] sm:$0xff] }
 0x11c   : > { %v3819_v31 = vpack.c.bf16 %v1190_v12, %v1186_v62  ;;  %v3823_v63 = vsub.f32 %v1155_v42, %v1190_v12  ;;  %v2848_v13 = vpack.c.bf16 %v1284_v50, %v1272_v56  ;;  %v1810_v34 = vand.u32 4294901760, %v1809_v59 }
 0x11d   : > { %v1817_v56 = vand.u32 4294901760, %v1816_v32 }
 0x11e   : > { %2837 = vmatpush1.bf16.msra.mxu0 %v3617_v15  ;;  %v3124_v15 = vmov 0.0   ;;  %2843 = vmatprep.subr.bf16.mxu1 %v3819_v31  ;;  %v1300_v51 = vand.u32 4294901760, %v3823_v63  ;;  %v2858_v2 = vpack.c.bf16 %v3823_v63, %v3821_v57  ;;  %v1156_v57 = vld [vmem:[%s4135_s5 + $0x58] sm:$0xff] }
 0x11f   : > { %1250 = vmatprep.mubr.f32.mxu1 %v3124_v15  ;;  %2845 = vmatpush1.bf16.msra.mxu1 %v3827_v9  ;;  %v1731_v37 = vand.u32 4294901760, %v1156_v57 }
 0x120   : > { %v1301_v5 = vsub.f32 %v3823_v63, %v1300_v51  ;;  %2847 = vmatprep.subr.bf16.mxu1 %v2846_v4  ;;  %v2874_v54 = vpack.c.bf16 %v1300_v51, %v1288_v55  ;;  %v1802_v63 = vsub.f32 %v1147_v35, %v1722_v29  ;;  %v1811_v51 = vsub.f32 %v1809_v59, %v1810_v34  ;;  %v3024_v29 = vld [vmem:[%s4139_s9] sm:$0xff] }
 0x121   : > { %1134 = vmatmul.mubr.f32.vlgmr.msra.gmra.mrb[0].mxu0 %v3681_v40  ;;  %v2852_v40 = vpack.c.bf16 %v1308_v46, %v1296_v33  ;;  %v1823_v27 = vsub.f32 %v1156_v57, %v1731_v37 }
 0x122   : > { %v1302_v28 = vand.u32 4294901760, %v1301_v5  ;;  %v1803_v52 = vand.u32 4294901760, %v1802_v63  ;;  %v1812_v60 = vand.u32 4294901760, %v1811_v51 }
 0x123   : > { %v1824_v50 = vand.u32 4294901760, %v1823_v27  ;;  %v2902_v23 = vpack.c.bf16 %v1823_v27, %v1816_v32 }
 0x124   : > { %v2850_v44 = vpack.c.bf16 %v1302_v28, %v1290_v8  ;;  %v1804_v55 = vsub.f32 %v1802_v63, %v1803_v52  ;;  %v2911_v7 = vpack.c.bf16 %v1810_v34, %v1803_v52  ;;  %v1159_v28 = vlaneseq  ;;  %v3025_v52 = vld [vmem:[%s4139_s9 + $0x8] sm:$0xff]  ;;  %v353_v34 = vld [vmem:[%s4139_s9 + $0x18] sm:$0xff] }
 0x125   : > { %v1825_v61 = vsub.f32 %v1823_v27, %v1824_v50  ;;  %v2914_v8 = vpack.c.bf16 %v1824_v50, %v1817_v56 }
 0x126   : > { %v1160_v33 = vshrl.u32 %v1159_v28, 7 }
 0x127   : > { %v1826_v10 = vand.u32 4294901760, %v1825_v61 }
 0x128   : > { %v1161_v46 = vsub.s32 0, %v1160_v33 }
 0x1a2   : > { %v687_v47 = vpop.f32.mrb[0].mxu1 }
 0x1a3   : > { %v689_v24 = vpop.f32.mrb[1].mxu1  ;;  %v2922_v18 = vadd.f32 %v2535_v11, %v687_v47 }
 0x1f4   : > { %v1135_v21 = vpop.f32.mrb[0].mxu0 }
 0x1f5   : > { %v2923_v22 = vadd.f32 %v2922_v18, %v1135_v21  ;;  %v1137_v45 = vpop.f32.mrb[1].mxu0 }
 0x1f7   : > { %v2536_v48 = vmul.f32 -1.442695, %v2923_v22 }
 0x1f9   : > { %3008 = vpow2.f32 %v2536_v48 }
 0x203   : > { %v3009_v16 = vpop.eup %3008 }
 0x204   : > { %v1142_v58 = vadd.f32 1.0, %v3009_v16 }
 0x206   : > { %3010 = vrcp.f32 %v1142_v58 }
 0x210   : > { %v3011_v17 = vpop.eup %3010 }
 0x211   : > { %v1176_v42 = vsel %vm1174_vm5, %v3011_v17, 0  ;;  %2384 = vst.msk [vmem:[#allocation4] sm:$0xff] %vm1174_vm5, %v3011_v17 }
 0x212   : > { %v3856_v20 = vand.u32 4294901760, %v1176_v42 }
 0x214   : > { %v3859_v62 = vsub.f32 %v1176_v42, %v3856_v20 }
 0x216   : > { %v3862_v12 = vand.u32 4294901760, %v3859_v62 }
 0x218   : > { %v1254_v41 = vsub.f32 %v3859_v62, %v3862_v12 }
 0x21a   : > { %v3866_v1 = vand.u32 4294901760, %v1254_v41 }
 0x21c   : > { %1256 = vmatmul.mubr.f32.vlgmr.msra.gmra.mrb[2].mxu1 %v3866_v1 }
 0x21d   : > { %2849 = vmatpush1.bf16.msra.mxu1 %v2848_v13  ;;  %1366 = vmatprep.mubr.f32.mxu1 %v3124_v15  ;;  %v2899_v13 = vpack.c.bf16 %v1809_v59, %v1802_v63  ;;  %v356_v63 = vld [vmem:[%s4139_s9 + $0x30] sm:$0xff] }
 0x21e   : > { %2851 = vmatprep.subr.bf16.mxu1 %v2850_v44  ;;  %v1157_v44 = vld [vmem:[%s4136_s6] sm:$0x7] }
 0x221   : > { %2853 = vmatpush1.bf16.msra.mxu1 %v2852_v40  ;;  %v1162_v40 = vrot.slane %v1157_v44, %v1161_v46 }
 0x222   : > { %2855 = vmatprep.subr.bf16.mxu1 %v2854_v43 }
 0x224   : > { %1368 = vmatmul.mubr.f32.vlgmr.msra.gmra.mrb[2].mxu1 %v3856_v20 }
 0x225   : > { %2857 = vmatpush1.bf16.msra.mxu1 %v2856_v25  ;;  %1454 = vmatprep.mubr.f32.mxu1 %v3124_v15 }
 0x226   : > { %2859 = vmatprep.subr.bf16.mxu1 %v2858_v2 }
 0x229   : > { %2861 = vmatpush1.bf16.msra.mxu1 %v2860_v19 }
 0x22a   : > { %2863 = vmatprep.subr.bf16.mxu1 %v3788_v39 }
 0x22c   : > { %1457 = vmatmul.mubr.f32.vlgmr.msra.gmra.mrb[2].mxu1 %v3859_v62 }
 0x22d   : > { %2865 = vmatpush1.bf16.msra.mxu1 %v3794_v49  ;;  %1535 = vmatprep.mubr.f32.mxu1 %v3124_v15 }
 0x22e   : > { %2867 = vmatprep.subr.bf16.mxu1 %v3819_v31 }
 0x231   : > { %2869 = vmatpush1.bf16.msra.mxu1 %v3827_v9 }
 0x232   : > { %2871 = vmatprep.subr.bf16.mxu1 %v2870_v26  ;;  %v1165_v26 = vsub.s32 1, %v1160_v33 }
 0x234   : > { %1539 = vmatmul.mubr.f32.vlgmr.msra.gmra.mrb[2].mxu1 %v3862_v12 }
 0x235   : > { %2873 = vmatpush1.bf16.msra.mxu1 %v2872_v38  ;;  %1633 = vmatprep.mubr.f32.mxu1 %v3124_v15  ;;  %v1166_v38 = vrot.slane %v1157_v44, %v1165_v26 }
 0x236   : > { %2875 = vmatprep.subr.bf16.mxu1 %v2874_v54 }
 0x239   : > { %2877 = vmatpush1.bf16.msra.mxu1 %v2876_v6 }
 0x23a   : > { %2879 = vmatprep.subr.bf16.mxu1 %v3788_v39  ;;  %v2890_v39 = vpack.c.bf16 %v1731_v37, %v1728_v36 }
 0x23c   : > { %1635 = vmatmul.mubr.f32.vlgmr.msra.gmra.mrb[2].mxu1 %v3856_v20 }
 0x23d   : > { %2881 = vmatpush1.bf16.msra.mxu1 %v3794_v49  ;;  %1713 = vmatprep.mubr.f32.mxu1 %v3124_v15  ;;  %v1805_v49 = vand.u32 4294901760, %v1804_v55 }
 0x23e   : > { %2883 = vmatprep.subr.bf16.mxu1 %v3819_v31  ;;  %v1818_v31 = vsub.f32 %v1816_v32, %v1817_v56 }
 0x240   : > { %v1819_v4 = vand.u32 4294901760, %v1818_v31 }
 0x241   : > { %2885 = vmatpush1.bf16.msra.mxu1 %v3827_v9  ;;  %v2893_v9 = vpack.c.bf16 %v1812_v60, %v1805_v49 }
 0x242   : > { %2886 = vmatprep.subr.bf16.mxu1 %v3122_v14  ;;  %v2896_v5 = vpack.c.bf16 %v1826_v10, %v1819_v4  ;;  %v357_v4 = vld [vmem:[%s4139_s9 + $0x38] sm:$0xff] }
 0x244   : > { %1715 = vmatmul.mubr.f32.vlgmr.msra.gmra.mrb[2].mxu1 %v3856_v20 }
 0x245   : > { %2888 = vmatpush3.bf16.msra.mxu1 %v2887_v53  ;;  %2582 = vmatprep.mubr.msk.f32.mxu1 %vm3125_vm6, %v3124_v15 }
 0x246   : > { %2889 = vmatprep.subr.bf16.mxu1 %v3122_v14 }
 0x249   : > { %2891 = vmatpush3.bf16.msra.mxu1 %v2890_v39 }
 0x24a   : > { %2892 = vmatprep.subr.bf16.mxu1 %v3122_v14 }
 0x24c   : > { %2583 = vmatmul.mubr.f32.vlgmr.msra.gmra.mrb[4].mxu1 %v3866_v1 }
 0x24d   : > { %2894 = vmatpush3.bf16.msra.mxu1 %v2893_v9  ;;  %2593 = vmatprep.mubr.msk.f32.mxu1 %vm3125_vm6, %v3124_v15 }
 0x24e   : > { %2895 = vmatprep.subr.bf16.mxu1 %v3122_v14 }
 0x251   : > { %2897 = vmatpush3.bf16.msra.mxu1 %v2896_v5 }
 0x252   : > { %2898 = vmatprep.subr.bf16.mxu1 %v3122_v14 }
 0x254   : > { %2594 = vmatmul.mubr.f32.vlgmr.msra.gmra.mrb[4].mxu1 %v3856_v20 }
 0x255   : > { %2900 = vmatpush3.bf16.msra.mxu1 %v2899_v13  ;;  %2604 = vmatprep.mubr.msk.f32.mxu1 %vm3125_vm6, %v3124_v15 }
 0x256   : > { %2901 = vmatprep.subr.bf16.mxu1 %v3122_v14 }
 0x259   : > { %2903 = vmatpush3.bf16.msra.mxu1 %v2902_v23 }
 0x25a   : > { %2904 = vmatprep.subr.bf16.mxu1 %v3122_v14 }
 0x25c   : > { %2605 = vmatmul.mubr.f32.vlgmr.msra.gmra.mrb[4].mxu1 %v3859_v62 }
 0x25d   : > { %2906 = vmatpush3.bf16.msra.mxu1 %v2887_v53  ;;  %2615 = vmatprep.mubr.msk.f32.mxu1 %vm3125_vm6, %v3124_v15 }
 0x25e   : > { %2907 = vmatprep.subr.bf16.mxu1 %v3122_v14 }
 0x261   : > { %2909 = vmatpush3.bf16.msra.mxu1 %v2890_v39 }
 0x262   : > { %2910 = vmatprep.subr.bf16.mxu1 %v3122_v14 }
 0x264   : > { %2616 = vmatmul.mubr.f32.vlgmr.msra.gmra.mrb[4].mxu1 %v3862_v12 }
 0x265   : > { %2912 = vmatpush3.bf16.msra.mxu1 %v2911_v7  ;;  %2626 = vmatprep.mubr.msk.f32.mxu1 %vm3125_vm6, %v3124_v15 }
 0x266   : > { %2913 = vmatprep.subr.bf16.mxu1 %v3122_v14 }
 0x269   : > { %2915 = vmatpush3.bf16.msra.mxu1 %v2914_v8 }
 0x26a   : > { %2916 = vmatprep.subr.bf16.mxu1 %v3122_v14 }
 0x26c   : > { %2627 = vmatmul.mubr.f32.vlgmr.msra.gmra.mrb[4].mxu1 %v3856_v20 }
 0x26d   : > { %2918 = vmatpush3.bf16.msra.mxu1 %v2887_v53  ;;  %2637 = vmatprep.mubr.msk.f32.mxu1 %vm3125_vm6, %v3124_v15  ;;  %v1169_v15 = vsub.s32 2, %v1160_v33  ;;  %v355_v53 = vld [vmem:[%s4139_s9 + $0x28] sm:$0xff] }
 0x26e   : > { %2919 = vmatprep.subr.bf16.mxu1 %v3122_v14 }
 0x26f   : > { %v1170_v14 = vrot.slane %v1157_v44, %v1169_v15 }
 0x271   : > { %2921 = vmatpush3.bf16.msra.mxu1 %v2890_v39 }
 0x274   : > { %2638 = vmatmul.mubr.f32.vlgmr.msra.gmra.mrb[4].mxu1 %v3856_v20 }
 0x317   : > { %v1716_v43 = vpop.f32.mrb[2].mxu1 }
 0x318   : > { %v2924_v47 = vadd.f32 %v1716_v43, %v1162_v40  ;;  %v1718_v24 = vpop.f32.mrb[3].mxu1 }
 0x319   : > { %v3936_v6 = vadd.f32 %v1718_v24, %v1166_v38 }
 0x31a   : > { %2207 = vrot.lane.b32.xlu1 %v2924_v47, %s4158_s28 }
 0x31b   : > { %v2537_v46 = vmul.f32 -1.442695, %v3936_v6 }
 0x347   : > { %v2202_v25 = vpop.f32.mrb[4].mxu1 }
 0x348   : > { %v2926_v2 = vadd.f32 %v2202_v25, %v1170_v14  ;;  %v2639_v19 = vpop.f32.mrb[5].mxu1 }
 0x34a   : > { %2426 = vst.msk [vmem:[%s4179_s14] sm:$0xff] %vm370_vm3, %v2926_v2  ;;  %s3032_s14 = scalar_lea.vmem %s3031_s26, 256 }
 0x34b   : > { %p3034_p3 = scmp.lt.s32.totalorder %s3032_s14, %s3026_s24 }
 0x34d   : > { %p3035_p4 = por %p3034_p3, %p3033_p1 }
 0x34f   : > { %p3036_p7 = pnand %p3035_p4, %p3029_p0 }
 0x38c   : > { %v2208_v54 = vpop.permute.xlu1 %2207 }
 0x38d   : > { %v2210_v11 = vmax.f32 %v2924_v47, %v2208_v54 }
 0x38f   : > { %v2211_v18 = vmax.f32 %v2210_v11, %v3936_v6 }
 0x391   : > { %2216 = vrot.lane.b32.xlu0 %v2211_v18, %s4158_s28  ;;  %v2212_v16 = vsub.f32 %v2924_v47, %v2211_v18  ;;  %v2222_v58 = vsub.f32 %v3936_v6, %v2211_v18 }
 0x393   : > { %v2213_v17 = vmul.f32 1.442695, %v2212_v16  ;;  %v2223_v42 = vmul.f32 1.442695, %v2222_v58 }
 0x403   : > { %v2217_v21 = vpop.permute.xlu0 %2216 }
 0x404   : > { %v2219_v22 = vsub.f32 %v2924_v47, %v2217_v21 }
 0x406   : > { %v2220_v45 = vmul.f32 1.442695, %v2219_v22 }
 0x408   : > { %3012 = vpow2.f32 %v2220_v45 }
 0x409   : > { %3014 = vpow2.f32 %v2213_v17 }
 0x40a   : > { %3016 = vpow2.f32 %v2223_v42 }
 0x412   : > { %v3013_v48 = vpop.eup %3012 }
 0x413   : > { %2226 = vrot.lane.b32.xlu1 %v3013_v48, %s4158_s28  ;;  %v3015_v20 = vpop.eup %3014 }
 0x414   : > { %v3017_v41 = vpop.eup %3016 }
 0x485   : > { %v2227_v62 = vpop.permute.xlu1 %2226 }
 0x486   : > { %v2229_v12 = vadd.f32 %v3015_v20, %v2227_v62 }
 0x488   : > { %v2230_v1 = vadd.f32 %v3017_v41, %v2229_v12 }
 0x48a   : > { %3018 = vrcp.f32 %v2230_v1 }
 0x48b   : > { %3020 = vpow2.f32 %v2537_v46 }
 0x494   : > { %v3019_v35 = vpop.eup %3018 }
 0x495   : > { %2235 = vrot.lane.b32.xlu0 %v3019_v35, %s4158_s28  ;;  %v2233_v3 = vmul.f32 %v3019_v35, %v3015_v20  ;;  %v2239_v57 = vmul.f32 %v3019_v35, %v3017_v41  ;;  %v3021_v24 = vpop.eup %3020 }
 0x496   : > { %v2243_v15 = vadd.f32 1.0, %v3021_v24 }
 0x497   : > { %v2336_v59 = vmul.f32 %v3024_v29, %v2239_v57  ;;  %v2338_v36 = vmul.f32 %v2239_v57, %v352_v0  ;;  %v2340_v37 = vmul.f32 %v2239_v57, %v354_v30  ;;  %v2337_v55 = vmul.f32 %v3025_v52, %v2239_v57 }
 0x498   : > { %v2339_v51 = vmul.f32 %v2239_v57, %v353_v34  ;;  %v2341_v56 = vmul.f32 %v2239_v57, %v355_v53  ;;  %v2342_v13 = vmul.f32 %v2239_v57, %v356_v63  ;;  %v2343_v23 = vmul.f32 %v2239_v57, %v357_v4 }
 0x499   : > { %2251 = vrot.lane.b32.xlu0 %v3024_v29, %s4158_s28  ;;  %3022 = vrcp.f32 %v2243_v15 }
 0x49d   : > { %2255 = vrot.lane.b32.xlu0 %v352_v0, %s4158_s28 }
 0x4a1   : > { %2259 = vrot.lane.b32.xlu0 %v354_v30, %s4158_s28 }
 0x4a3   : > { %v3023_v54 = vpop.eup %3022 }
 0x4a5   : > { %2263 = vrot.lane.b32.xlu0 %v356_v63, %s4158_s28 }
 0x4a9   : > { %2352 = vrot.lane.b32.xlu0 %v2336_v59, %s4158_s28 }
 0x4ad   : > { %2356 = vrot.lane.b32.xlu0 %v2338_v36, %s4158_s28 }
 0x4b1   : > { %2360 = vrot.lane.b32.xlu0 %v2340_v37, %s4158_s28 }
 0x507   : > { %v2236_v32 = vpop.permute.xlu0 %2235 }
 0x508   : > { %v2238_v27 = vmul.f32 %v3013_v48, %v2236_v32 }
 0x50a   : > { %2285 = vrot.lane.b32.xlu1 %v2238_v27, %s4158_s28 }
 0x50b   : > { %v2252_v7 = vpop.permute.xlu0 %2251 }
 0x50e   : > { %2253 = vrot.lane.b32.xlu1 %v3025_v52, %s4158_s28 }
 0x50f   : > { %v2256_v28 = vpop.permute.xlu0 %2255 }
 0x512   : > { %2257 = vrot.lane.b32.xlu1 %v353_v34, %s4158_s28 }
 0x513   : > { %v2260_v44 = vpop.permute.xlu0 %2259 }
 0x516   : > { %2261 = vrot.lane.b32.xlu1 %v355_v53, %s4158_s28 }
 0x517   : > { %v3995_v43 = vpop.permute.xlu0 %2263 }
 0x51a   : > { %2273 = vrot.lane.b32.xlu1 %v2233_v3, %s4158_s28 }
 0x51b   : > { %v2353_v14 = vpop.permute.xlu0 %2352 }
 0x51e   : > { %2354 = vrot.lane.b32.xlu1 %v2337_v55, %s4158_s28 }
 0x51f   : > { %v2357_v2 = vpop.permute.xlu0 %2356 }
 0x522   : > { %2358 = vrot.lane.b32.xlu1 %v2339_v51, %s4158_s28 }
 0x523   : > { %v3999_v26 = vpop.permute.xlu0 %2360 }
 0x526   : > { %2362 = vrot.lane.b32.xlu1 %v2341_v56, %s4158_s28 }
 0x57c   : > { %v2286_v50 = vpop.permute.xlu1 %2285 }
 0x57d   : > { %v2288_v39 = vmul.f32 %v3025_v52, %v2286_v50  ;;  %v2289_v49 = vmul.f32 %v2286_v50, %v352_v0  ;;  %v2290_v60 = vmul.f32 %v2286_v50, %v353_v34  ;;  %v2291_v31 = vmul.f32 %v2286_v50, %v354_v30 }
 0x57e   : > { %v2292_v61 = vmul.f32 %v2286_v50, %v355_v53  ;;  %v2293_v9 = vmul.f32 %v2286_v50, %v356_v63  ;;  %v2294_v10 = vmul.f32 %v2286_v50, %v357_v4  ;;  %v2295_v5 = vmul.f32 -1.0, %v2286_v50 }
 0x57f   : > { %2304 = vrot.lane.b32.xlu0 %v2288_v39, %s4158_s28  ;;  %2306 = vrot.lane.b32.xlu1 %v2289_v49, %s4158_s28 }
 0x580   : > { %v2254_v8 = vpop.permute.xlu1 %2253 }
 0x583   : > { %2308 = vrot.lane.b32.xlu0 %v2290_v60, %s4158_s28  ;;  %2310 = vrot.lane.b32.xlu1 %v2291_v31, %s4158_s28 }
 0x584   : > { %v2258_v33 = vpop.permute.xlu1 %2257 }
 0x587   : > { %2312 = vrot.lane.b32.xlu0 %v2292_v61, %s4158_s28  ;;  %2314 = vrot.lane.b32.xlu1 %v2293_v9, %s4158_s28 }
 0x588   : > { %v3993_v40 = vpop.permute.xlu1 %2261 }
 0x58b   : > { %2316 = vrot.lane.b32.xlu0 %v2294_v10, %s4158_s28  ;;  %2318 = vrot.lane.b32.xlu1 %v2295_v5, %s4158_s28 }
 0x58c   : > { %v3997_v47 = vpop.permute.xlu1 %2273 }
 0x58d   : > { %v2276_v6 = vmul.f32 %v3023_v54, %v3997_v47  ;;  %v2277_v11 = vmul.f32 %v3997_v47, %v2252_v7  ;;  %v2278_v58 = vmul.f32 %v3997_v47, %v2254_v8  ;;  %v2279_v17 = vmul.f32 %v3997_v47, %v2256_v28 }
 0x58e   : > { %v2280_v35 = vmul.f32 %v3997_v47, %v2258_v33  ;;  %v2281_v3 = vmul.f32 %v3997_v47, %v2260_v44 }
 0x58f   : > { %2364 = vrot.lane.b32.xlu0 %v2342_v13, %s4158_s28  ;;  %2366 = vrot.lane.b32.xlu1 %v2343_v23, %s4158_s28 }
 0x590   : > { %v2355_v25 = vpop.permute.xlu1 %2354 }
 0x594   : > { %v2359_v19 = vpop.permute.xlu1 %2358 }
 0x598   : > { %v4001_v38 = vpop.permute.xlu1 %2362 }
 0x5f1   : > { %v2305_v18 = vpop.permute.xlu0 %2304  ;;  %v2307_v21 = vpop.permute.xlu1 %2306 }
 0x5f2   : > { %v2328_v22 = vadd.f32 %v2305_v18, %v2276_v6  ;;  %v2329_v45 = vadd.f32 %v2307_v21, %v2277_v11 }
 0x5f4   : > { %v2376_v48 = vadd.f32 %v2353_v14, %v2328_v22  ;;  %v2377_v16 = vadd.f32 %v2355_v25, %v2329_v45 }
 0x5f5   : > { %v2309_v42 = vpop.permute.xlu0 %2308  ;;  %v2311_v20 = vpop.permute.xlu1 %2310 }
 0x5f6   : > { %v2330_v62 = vadd.f32 %v2309_v42, %v2278_v58  ;;  %v2331_v12 = vadd.f32 %v2311_v20, %v2279_v17  ;;  %2393 = vrot.lane.b32.xlu0 %v2376_v48, %s4158_s28  ;;  %2395 = vrot.lane.b32.xlu1 %v2377_v16, %s4158_s28 }
 0x5f8   : > { %v2378_v41 = vadd.f32 %v2357_v2, %v2330_v62  ;;  %v2379_v1 = vadd.f32 %v2359_v19, %v2331_v12 }
 0x5f9   : > { %v2313_v29 = vpop.permute.xlu0 %2312  ;;  %v2315_v0 = vpop.permute.xlu1 %2314 }
 0x5fa   : > { %3039 = shalt.err (!%p3036_p7)
}
 0x5fb   : > { %s3040_s16 = scalar_lea.hbm %s4015_s17, 128  ;;  %s3044_s25 = scalar_lea.hbm %s4137_s7, 1024 }
 0x5fc   : > { %p3041_p8 = scmp.ne.s32.totalorder %s4015_s17, %s3040_s16  ;;  %p3045_p11 = scmp.lt.u32.totalorder %s4015_s17, %s4137_s7 }
 0x5fd   : > { %p3046_p12 = scmp.lt.u32.totalorder %s3044_s25, %s3040_s16  ;;  %p3048_p0 = scmp.lt.u32.totalorder %s3040_s16, %s4015_s17 }
 0x5fe   : > { %p3042_p9 = pnand %p3041_p8, %p3219_p5 }
 0x5ff   : > { %p3047_p13 = por %p3046_p12, %p3045_p11 }
 0x600   : > { %p3043_p10 = pneg %p3042_p9 }
 0x601   : > { %p3049_p1 = por %p3048_p0, %p3047_p13 }
 0x603   : > { %p3050_p3 = pnand %p3049_p1, %p3043_p10 }
 0x605   : > { %3053 = shalt.err (!%p3050_p3)
}
 0x606   : > { %2955 = dma.vmem_to_hbm [thread:$0]  (%p3219_p5), %s4019_s29, 128, %s4015_s17, %s2428_s23   ;;  %v2332_v30 = vadd.f32 %v2313_v29, %v2280_v35  ;;  %v2333_v57 = vadd.f32 %v2315_v0, %v2281_v3 }
 0x607   : > { %s4182_s24 = smov 64   ;;  %s3054_s28 = scalar_lea.vmem %s2453_s27, 128 }
 0x608   : > { %2397 = vrot.lane.b32.xlu0 %v2378_v41, %s4182_s24  ;;  %2399 = vrot.lane.b32.xlu1 %v2379_v1, %s4182_s24  ;;  %p3055_p4 = scmp.ne.s32.totalorder %s2453_s27, %s3054_s28  ;;  %p3061_p9 = scmp.lt.s32.totalorder %s2453_s27, %s2453_s27 }
 0x609   : > { %p3062_p10 = scmp.lt.s32.totalorder %s3054_s28, %s3054_s28 }
 0x60a   : > { %p3056_p7 = pnand %p3055_p4, %p194_p2 }
 0x60b   : > { %p3063_p11 = por %p3062_p10, %p3061_p9 }
 0x60c   : > { %p3057_p8 = pneg %p3056_p7 }
 0x60e   : > { %p3064_p12 = pnand %p3063_p11, %p3057_p8 }
 0x610   : > { %3067 = shalt.err (!%p3064_p12)
}
 0x611   : > { %s3068_s29 = scalar_lea.hbm %s4138_s8, 128 }
 0x612   : > { %p3069_p5 = scmp.ne.s32.totalorder %s4138_s8, %s3068_s29  ;;  %p3074_p1 = scmp.lt.u32.totalorder %s3068_s29, %s4138_s8 }
 0x614   : > { %p3070_p13 = pnand %p3069_p5, %p194_p2 }
 0x616   : > { %p3071_p0 = pneg %p3070_p13 }
 0x618   : > { %p3076_p3 = pnand %p3074_p1, %p3071_p0 }
 0x61a   : > { %3079 = shalt.err (!%p3076_p3)
}
 0x61b   : > { %2957 = dma.vmem_to_hbm [thread:$0]  (%p194_p2), %s2453_s27, 128, %s4138_s8, [#allocation5]   ;;  %v2380_v63 = vadd.f32 %v3999_v26, %v2332_v30  ;;  %v2381_v59 = vadd.f32 %v4001_v38, %v2333_v57  ;;  %v2317_v36 = vpop.permute.xlu0 %2316  ;;  %v2319_v37 = vpop.permute.xlu1 %2318  ;;  %v2282_v32 = vmul.f32 %v3997_v47, %v3993_v40  ;;  %v2283_v27 = vmul.f32 %v3997_v47, %v3995_v43 }
 0x61c   : > { %vm2417_vm7 = vcmask 523264  }
 0x61d   : > { %2401 = vrot.lane.b32.xlu0 %v2380_v63, %s4182_s24  ;;  %2403 = vrot.lane.b32.xlu1 %v2381_v59, %s4182_s24  ;;  %v2334_v52 = vadd.f32 %v2317_v36, %v2282_v32  ;;  %v2335_v34 = vadd.f32 %v2319_v37, %v2283_v27 }
 0x61f   : > { %v2365_v53 = vpop.permute.xlu0 %2364  ;;  %v2367_v55 = vpop.permute.xlu1 %2366 }
 0x620   : > { %v2382_v51 = vadd.f32 %v2365_v53, %v2334_v52  ;;  %v2383_v56 = vadd.f32 %v2367_v55, %v2335_v34 }
 0x622   : > { %2405 = vrot.lane.b32.xlu0 %v2382_v51, %s4182_s24  ;;  %2407 = vrot.lane.b32.xlu1 %v2383_v56, %s4182_s24 }
 0x668   : > { %v2394_v50 = vpop.permute.xlu0 %2393  ;;  %v2396_v39 = vpop.permute.xlu1 %2395 }
 0x669   : > { %2418 = vst.msk [vmem:[%s4139_s9] sm:$0xff] %vm2417_vm7, %v2394_v50  ;;  %2419 = vst.msk [vmem:[%s4139_s9 + $0x8] sm:$0xff] %vm2417_vm7, %v2396_v39 }
 0x67a   : > { %v2398_v49 = vpop.permute.xlu0 %2397  ;;  %v2400_v60 = vpop.permute.xlu1 %2399 }
 0x67b   : > { %2420 = vst.msk [vmem:[%s4139_s9 + $0x10] sm:$0xff] %vm2417_vm7, %v2398_v49  ;;  %2421 = vst.msk [vmem:[%s4139_s9 + $0x18] sm:$0xff] %vm2417_vm7, %v2400_v60 }
 0x68f   : > { %v2402_v31 = vpop.permute.xlu0 %2401  ;;  %v2404_v61 = vpop.permute.xlu1 %2403 }
 0x690   : > { %2422 = vst.msk [vmem:[%s4139_s9 + $0x20] sm:$0xff] %vm2417_vm7, %v2402_v31  ;;  %2423 = vst.msk [vmem:[%s4139_s9 + $0x28] sm:$0xff] %vm2417_vm7, %v2404_v61 }
 0x694   : > { %v2406_v9 = vpop.permute.xlu0 %2405  ;;  %v2408_v4 = vpop.permute.xlu1 %2407 }
 0x695   : > { %2424 = vst.msk [vmem:[%s4139_s9 + $0x30] sm:$0xff] %vm2417_vm7, %v2406_v9  ;;  %2425 = vst.msk [vmem:[%s4139_s9 + $0x38] sm:$0xff] %vm2417_vm7, %v2408_v4 }
 0x696   : > { %3097 = dma.done.wait (%p194_p2), [#allocation5], 128  }
 0x697   : > { %3099 = vsyncadd (%p194_p2), [#allocation5], 4294967168 }
 0x698 PF: > { %p2967_p4 = scmp.ge.s32.totalorder %s3118_s12, 2  ;;  %s2474_s19 = sand.u32 1, %s3106_s30  }
 0x699   : > { %s2475_s14 = scalar_lea.sflag [#allocation3], %s2474_s19 }
 0x69a   : > { %p2962_p7 = pnand %p2967_p4, %p3223_p6 }
 0x69c   : > { %3101 = dma.done.wait (!%p2962_p7), %s2475_s14, 128  }
 0x69d   : > { %3103 = vsyncadd (!%p2962_p7), %s2475_s14, 4294967168  ;;  %p21_p8 = scmp.ge.s32.totalorder %s3204_s15, 10   ;;  %s4183_s30 = smov %s3110_s10 }
 0x69e   : > { %s4184_s10 = smov %s3114_s11  ;;  %s4185_s11 = smov %s3215_s18 }
 0x69f   : > { %s4186_s12 = smov %s3204_s15  ;;  %23 = sbr.rel (!%p21_p8) target bundleno = 4 (0x4), region = 103 }
 0x6a6   :  { %2480 = vsyncpa [#allocation3], 1 }
 0x6a7   :  { %2482 = vsyncpa [#allocation3 + $0x1], 1 }
 0x6a8   :  { %2483 = vsyncpa [#allocation5], 1 }

</bundles_post_ra>
